<compile_context>
chip_gen: v7x
topology: tpu7x:2x2x1
jax: 0.10.0
libtpu: 0.0.40
codegen_flags: <defaults>
</compile_context>

<pallas_src>
import functools

import jax
import jax.numpy as jnp
from jax import lax
from jax.experimental import pallas as pl
from jax.experimental.pallas import tpu as pltpu


def _phase_taps(K, stride, padding):
    """Per output phase r in [0, stride): list of (kernel_tap, input_offset).

    ConvTranspose identity: out[s*oy + r] += x[oy + e] * w[k]  for every k with
    k == (r + padding) mod stride,  e = (r + padding - k) // stride.
    """
    taps = []
    for r in range(stride):
        m0 = (r + padding) % stride
        taps.append([(k, (r + padding - k) // stride) for k in range(m0, K, stride)])
    return taps


def _deconv_block_kernel(xp_ref, w_ref, gamma_ref, beta_ref, o_ref, *,
                         Hop, Wop, Wh, Ww, off_h, off_w, stride, Cout,
                         Ho, Wo, norm, activation, eps, slope, needs_mask):
    # xp_ref   : (1, Hp, Wp, Cin)  zero-padded, UN-dilated input for this image
    # w_ref    : (Wh*Ww*Cin, s*s*Cout) phase-packed weight
    # gamma/beta_ref : (1, Cout)
    # o_ref    : (1, Hop, Wop, s*s*Cout) phase-major output (depth-to-space later)
    xp = xp_ref[0]                                     # (Hp, Wp, Cin)

    # ---- im2col over the small union window (static slices, no dilation) ----
    cols = []
    for dh in range(Wh):
        h0 = off_h + dh
        for dw in range(Ww):
            w0 = off_w + dw
            cols.append(xp[h0:h0 + Hop, w0:w0 + Wop, :])   # (Hop, Wop, Cin)
    patch = cols[0] if len(cols) == 1 else jnp.concatenate(cols, axis=-1)

    # ---- single fused MXU contraction, f32 accumulation ----
    y = lax.dot_general(patch, w_ref[...],
                        dimension_numbers=(((2,), (0,)), ((), ())),
                        preferred_element_type=jnp.float32)  # (Hop, Wop, s*s*Cout)

    nphase = stride * stride
    if norm == 'instance':
        # InstanceNorm2d(affine=True, track_running_stats=False): per-(n, c)
        # spatial stats (biased variance).  Spatial positions of channel `co`
        # are spread across the s*s phase groups -> reduce over space AND phases.
        count = float(Ho * Wo)
        if needs_mask:
            # Rows/cols computed past the true output extent (Ho % s != 0 etc.)
            # must not pollute the statistics.
            oy = lax.broadcasted_iota(jnp.int32, y.shape, 0)
            ox = lax.broadcasted_iota(jnp.int32, y.shape, 1)
            ch = lax.broadcasted_iota(jnp.int32, y.shape, 2)
            grp = ch // Cout
            r_ph = grp // stride
            c_ph = grp % stride
            valid = ((oy * stride + r_ph) < Ho) & ((ox * stride + c_ph) < Wo)
            ym = jnp.where(valid, y, 0.0)
        else:
            ym = y
        # one pass: sum and sum-of-squares
        ssum = jnp.sum(ym, axis=(0, 1), keepdims=True)         # (1, 1, s*s*Cout)
        ssq = jnp.sum(ym * ym, axis=(0, 1), keepdims=True)
        sum_c = ssum[:, :, 0:Cout]
        sq_c = ssq[:, :, 0:Cout]
        for gi in range(1, nphase):                            # combine phase groups
            sum_c = sum_c + ssum[:, :, gi * Cout:(gi + 1) * Cout]
            sq_c = sq_c + ssq[:, :, gi * Cout:(gi + 1) * Cout]
        mean = sum_c * (1.0 / count)
        var = sq_c * (1.0 / count) - mean * mean
        inv = lax.rsqrt(var + eps)                             # EUP slot
        scale = gamma_ref[...] * inv                           # (1, 1, Cout)
        shift = beta_ref[...] - mean * scale
        if nphase > 1:
            scale = jnp.concatenate([scale] * nphase, axis=-1)  # (1, 1, s*s*Cout)
            shift = jnp.concatenate([shift] * nphase, axis=-1)
        y = y * scale + shift

    if activation == 'relu':
        y = jnp.maximum(y, 0.0)
    elif activation == 'leaky_relu':
        y = jnp.where(y >= 0, y, slope * y)

    o_ref[0] = y.astype(o_ref.dtype)


@functools.partial(jax.jit, static_argnames=('stride', 'padding', 'norm',
                                              'activation', 'eps', 'slope',
                                              'compute_dtype'))
def deconv_block(x, weight, gamma, beta, *, stride, padding,
                 norm='none', activation='none', eps=1e-5, slope=0.2,
                 compute_dtype=jnp.float32):
    """x: (N, Cin, H, W); weight: (Cin, Cout, K, K) (torch ConvTranspose2d, bias=False).

    output_padding=0, dilation=1 (the only config the module exposes).
    Use compute_dtype=jnp.bfloat16 on v6e/v7x for the matmul operands.
    """
    N, Cin, H, W = x.shape
    wCin, Cout, K, K2 = weight.shape
    assert wCin == Cin and K == K2
    s, p = int(stride), int(padding)

    if norm == 'batch':
        # TODO(synk): BatchNorm2d needs cross-batch statistics and running-stat
        # state updates (cross-grid / stateful) -- not implemented here.
        raise NotImplementedError("norm='batch' is not supported by this Pallas kernel")

    Ho = (H - 1) * s - 2 * p + K
    Wo = (W - 1) * s - 2 * p + K
    if Ho <= 0 or Wo <= 0:
        raise ValueError(f"non-positive output size ({Ho}, {Wo})")

    # ---- static sub-pixel tap tables (square kernel/stride/padding) ----
    taps = _phase_taps(K, s, p)
    all_e = [e for lst in taps for (_, e) in lst]
    dmin, dmax = min(all_e), max(all_e)
    Wh = dmax - dmin + 1                     # union-window extent per axis
    Ww = Wh
    Hop, Wop = -(-Ho // s), -(-Wo // s)      # phase-grid output extents (ceil)

    # zero-pad the UN-dilated input just enough for all window offsets
    pad_lo = max(0, -dmin)
    off = dmin + pad_lo                      # >= 0: first window offset into xpad
    Hp = max(H + pad_lo, Hop + off + Wh - 1)
    Wp = max(W + pad_lo, Wop + off + Ww - 1)
    pad_hi_h = Hp - H - pad_lo
    pad_hi_w = Wp - W - pad_lo

    x_nhwc = jnp.transpose(x, (0, 2, 3, 1)).astype(compute_dtype)
    xpad = jnp.pad(x_nhwc, ((0, 0), (pad_lo, pad_hi_h), (pad_lo, pad_hi_w), (0, 0)))

    # ---- phase-packed weight: (Wh*Ww*Cin, s*s*Cout) ----
    CC = Wh * Ww * Cin
    Nout = s * s * Cout
    wsrc = weight.astype(compute_dtype)
    wf = jnp.zeros((CC, Nout), compute_dtype)
    for r in range(s):
        for (kh, eh) in taps[r]:
            dh = eh - dmin
            for c in range(s):
                col0 = (r * s + c) * Cout
                for (kw, ew) in taps[c]:
                    dw = ew - dmin
                    row0 = (dh * Ww + dw) * Cin
                    wf = wf.at[row0:row0 + Cin, col0:col0 + Cout].set(wsrc[:, :, kh, kw])

    gamma2 = gamma.reshape(1, Cout).astype(jnp.float32)
    beta2 = beta.reshape(1, Cout).astype(jnp.float32)

    needs_mask = (Ho % s != 0) or (Wo % s != 0)

    kernel = functools.partial(
        _deconv_block_kernel, Hop=Hop, Wop=Wop, Wh=Wh, Ww=Ww,
        off_h=off, off_w=off, stride=s, Cout=Cout, Ho=Ho, Wo=Wo,
        norm=norm, activation=activation, eps=eps, slope=slope,
        needs_mask=needs_mask)

    itemsize = jnp.dtype(compute_dtype).itemsize
    cost = pl.CostEstimate(
        flops=int(2.0 * N * Ho * Wo * K * K * Cin * Cout),
        transcendentals=int(N * Cout if norm == 'instance' else 0),
        bytes_accessed=int(N * Hp * Wp * Cin * itemsize + CC * Nout * itemsize
                           + N * Hop * Wop * Nout * 4 + 2 * Cout * 4))

    out_k = pl.pallas_call(
        kernel,
        out_shape=jax.ShapeDtypeStruct((N, Hop, Wop, Nout), jnp.float32),
        grid_spec=pltpu.PrefetchScalarGridSpec(
            num_scalar_prefetch=0,
            grid=(N,),
            in_specs=[
                pl.BlockSpec((1, Hp, Wp, Cin), lambda n: (n, 0, 0, 0)),
                pl.BlockSpec((CC, Nout), lambda n: (0, 0)),
                pl.BlockSpec((1, Cout), lambda n: (0, 0)),
                pl.BlockSpec((1, Cout), lambda n: (0, 0)),
            ],
            out_specs=pl.BlockSpec((1, Hop, Wop, Nout), lambda n: (n, 0, 0, 0)),
        ),
        compiler_params=pltpu.CompilerParams(
            dimension_semantics=("parallel",),
            vmem_limit_bytes=32 * 1024 * 1024),
        cost_estimate=cost,
    )(xpad, wf, gamma2, beta2)

    # depth-to-space (cheap XLA glue): (N,Hop,Wop,s,s,Cout) -> (N,Ho,Wo,Cout) -> NCHW
    out = out_k.reshape(N, Hop, Wop, s, s, Cout)
    out = jnp.transpose(out, (0, 1, 3, 2, 4, 5)).reshape(N, Hop * s, Wop * s, Cout)
    out = out[:, :Ho, :Wo, :]
    return jnp.transpose(out, (0, 3, 1, 2))


def deconv_block_ref(x, weight, gamma, beta, *, stride, padding,
                     norm='none', activation='none', eps=1e-5, slope=0.2):
    """Pure-JAX reference with the same semantics (NCHW)."""
    K = weight.shape[2]
    w_conv = jnp.transpose(weight[:, :, ::-1, ::-1], (1, 0, 2, 3))  # (Cout,Cin,K,K)
    pp = K - 1 - padding
    y = lax.conv_general_dilated(
        x.astype(jnp.float32), w_conv.astype(jnp.float32),
        window_strides=(1, 1), padding=[(pp, pp), (pp, pp)],
        lhs_dilation=(stride, stride),
        dimension_numbers=('NCHW', 'OIHW', 'NCHW'))
    if norm == 'instance':
        mean = jnp.mean(y, axis=(2, 3), keepdims=True)
        var = jnp.mean(jnp.square(y - mean), axis=(2, 3), keepdims=True)
        y = (y - mean) / jnp.sqrt(var + eps)
        y = y * gamma[None, :, None, None] + beta[None, :, None, None]
    if activation == 'relu':
        y = jnp.maximum(y, 0.0)
    elif activation == 'leaky_relu':
        y = jnp.where(y >= 0, y, slope * y)
    return y


if __name__ == "__main__":
    # DeconvBlock(in_dim=4, out_dim=8, kernel_size=4, stride=2, padding=1, ...)
    N, Cin, Cout, H, W, K, S, P = 2, 4, 8, 16, 16, 4, 2, 1

    key = jax.random.PRNGKey(0)
    kx, kw = jax.random.split(key)
    x = jax.random.normal(kx, (N, Cin, H, W), dtype=jnp.float32)
    bound = 1.0 / (Cin * K * K) ** 0.5
    weight = jax.random.uniform(kw, (Cin, Cout, K, K), jnp.float32,
                                minval=-bound, maxval=bound)
    gamma = jnp.ones((Cout,), jnp.float32)   # InstanceNorm2d affine defaults
    beta = jnp.zeros((Cout,), jnp.float32)

    ok = True
    for norm, act in [('none', 'none'), ('instance', 'leaky_relu'),
                      ('instance', 'relu')]:
        out = deconv_block(x, weight, gamma, beta, stride=S, padding=P,
                           norm=norm, activation=act)
        out = jax.block_until_ready(out)
        ref = deconv_block_ref(x, weight, gamma, beta, stride=S, padding=P,
                               norm=norm, activation=act)
        ref = jax.block_until_ready(ref)
        if out.shape != ref.shape or not bool(jnp.allclose(out, ref,
                                                           rtol=1e-4, atol=1e-4)):
            ok = False

    print("KERNEL_OK" if ok else "KERNEL_MISMATCH")
</pallas_src>

<mosaic_0001>
module attributes {stable_mosaic.version = 11 : i64} {
  func.func @_deconv_block_kernel(%arg0: i32, %arg1: memref<1x18x18x4xf32, #tpu.memory_space<vmem>>, %arg2: memref<36x32xf32, #tpu.memory_space<vmem>>, %arg3: memref<1x8xf32, #tpu.memory_space<vmem>>, %arg4: memref<1x8xf32, #tpu.memory_space<vmem>>, %arg5: memref<1x16x16x32xf32, #tpu.memory_space<vmem>>) attributes {dimension_semantics = [#tpu.dimension_semantics<parallel>], iteration_bounds = array<i64: 2>, scalar_prefetch = 0 : i64, scratch_operands = 0 : i64, tpu.core_type = #tpu.core_type<tc>, window_params = [{transform_indices = @transform_0, window_bounds = array<i64: 1, 18, 18, 4>}, {pipeline_mode = #tpu.pipeline_mode<synchronous>, transform_indices = @transform_1, window_bounds = array<i64: 36, 32>}, {pipeline_mode = #tpu.pipeline_mode<synchronous>, transform_indices = @transform_2, window_bounds = array<i64: 1, 8>}, {pipeline_mode = #tpu.pipeline_mode<synchronous>, transform_indices = @transform_3, window_bounds = array<i64: 1, 8>}, {transform_indices = @transform_4, window_bounds = array<i64: 1, 16, 16, 32>}]} {
    %c0 = arith.constant 0 : index
    %c0_0 = arith.constant 0 : index
    %c0_1 = arith.constant 0 : index
    %c0_2 = arith.constant 0 : index
    %0 = vector.load %arg1[%c0, %c0_0, %c0_1, %c0_2] : memref<1x18x18x4xf32, #tpu.memory_space<vmem>>, vector<1x18x18x4xf32>
    %1 = vector.shape_cast %0 : vector<1x18x18x4xf32> to vector<18x18x4xf32>
    %2 = vector.extract_strided_slice %1 {offsets = [0, 0, 0], sizes = [16, 16, 4], strides = [1, 1, 1]} : vector<18x18x4xf32> to vector<16x16x4xf32>
    %3 = vector.extract_strided_slice %1 {offsets = [0, 1, 0], sizes = [16, 16, 4], strides = [1, 1, 1]} : vector<18x18x4xf32> to vector<16x16x4xf32>
    %4 = vector.extract_strided_slice %1 {offsets = [0, 2, 0], sizes = [16, 16, 4], strides = [1, 1, 1]} : vector<18x18x4xf32> to vector<16x16x4xf32>
    %5 = vector.extract_strided_slice %1 {offsets = [1, 0, 0], sizes = [16, 16, 4], strides = [1, 1, 1]} : vector<18x18x4xf32> to vector<16x16x4xf32>
    %6 = vector.extract_strided_slice %1 {offsets = [1, 1, 0], sizes = [16, 16, 4], strides = [1, 1, 1]} : vector<18x18x4xf32> to vector<16x16x4xf32>
    %7 = vector.extract_strided_slice %1 {offsets = [1, 2, 0], sizes = [16, 16, 4], strides = [1, 1, 1]} : vector<18x18x4xf32> to vector<16x16x4xf32>
    %8 = vector.extract_strided_slice %1 {offsets = [2, 0, 0], sizes = [16, 16, 4], strides = [1, 1, 1]} : vector<18x18x4xf32> to vector<16x16x4xf32>
    %9 = vector.extract_strided_slice %1 {offsets = [2, 1, 0], sizes = [16, 16, 4], strides = [1, 1, 1]} : vector<18x18x4xf32> to vector<16x16x4xf32>
    %10 = vector.extract_strided_slice %1 {offsets = [2, 2, 0], sizes = [16, 16, 4], strides = [1, 1, 1]} : vector<18x18x4xf32> to vector<16x16x4xf32>
    %11 = tpu.concatenate %2, %3, %4, %5, %6, %7, %8, %9, %10 in 2 : vector<16x16x4xf32>, vector<16x16x4xf32>, vector<16x16x4xf32>, vector<16x16x4xf32>, vector<16x16x4xf32>, vector<16x16x4xf32>, vector<16x16x4xf32>, vector<16x16x4xf32>, vector<16x16x4xf32> -> vector<16x16x36xf32>
    %c0_3 = arith.constant 0 : index
    %c0_4 = arith.constant 0 : index
    %12 = vector.load %arg2[%c0_3, %c0_4] : memref<36x32xf32, #tpu.memory_space<vmem>>, vector<36x32xf32>
    %cst = arith.constant dense<0.000000e+00> : vector<16x16x32xf32>
    %13 = tpu.matmul %11, %12, %cst {dimension_numbers = #tpu.dot_dimension_numbers<[2], [0], [0, 1], [1], [0, 0, 0, 1, 1, 1], [], []>} : vector<16x16x36xf32>, vector<36x32xf32>, vector<16x16x32xf32> -> vector<16x16x32xf32>
    %c0_5 = arith.constant 0 : index
    %c0_6 = arith.constant 0 : index
    %c0_7 = arith.constant 0 : index
    %c0_8 = arith.constant 0 : index
    %14 = vector.load %arg5[%c0_5, %c0_6, %c0_7, %c0_8] : memref<1x16x16x32xf32, #tpu.memory_space<vmem>>, vector<1x16x16x32xf32>
    %15 = vector.shape_cast %14 : vector<1x16x16x32xf32> to vector<16x16x32xf32>
    %16 = vector.shape_cast %13 : vector<16x16x32xf32> to vector<1x16x16x32xf32>
    tpu.vector_store %arg5[%c0_5, %c0_6, %c0_7, %c0_8], %16 {strides = array<i32>} : memref<1x16x16x32xf32, #tpu.memory_space<vmem>>, vector<1x16x16x32xf32>,
    return
  }
  func.func @transform_0(%arg0: i32) -> (i32, i32, i32, i32) {
    %c0_i32 = arith.constant 0 : i32
    %c0_i32_0 = arith.constant 0 : i32
    %c0_i32_1 = arith.constant 0 : i32
    %c0_i32_2 = arith.constant 0 : i32
    return %arg0, %c0_i32, %c0_i32_0, %c0_i32_1 : i32, i32, i32, i32
  }
  func.func @transform_1(%arg0: i32) -> (i32, i32) {
    %c0_i32 = arith.constant 0 : i32
    %c0_i32_0 = arith.constant 0 : i32
    %c0_i32_1 = arith.constant 0 : i32
    return %c0_i32, %c0_i32_0 : i32, i32
  }
  func.func @transform_2(%arg0: i32) -> (i32, i32) {
    %c0_i32 = arith.constant 0 : i32
    %c0_i32_0 = arith.constant 0 : i32
    %c0_i32_1 = arith.constant 0 : i32
    return %c0_i32, %c0_i32_0 : i32, i32
  }
  func.func @transform_3(%arg0: i32) -> (i32, i32) {
    %c0_i32 = arith.constant 0 : i32
    %c0_i32_0 = arith.constant 0 : i32
    %c0_i32_1 = arith.constant 0 : i32
    return %c0_i32, %c0_i32_0 : i32, i32
  }
  func.func @transform_4(%arg0: i32) -> (i32, i32, i32, i32) {
    %c0_i32 = arith.constant 0 : i32
    %c0_i32_0 = arith.constant 0 : i32
    %c0_i32_1 = arith.constant 0 : i32
    %c0_i32_2 = arith.constant 0 : i32
    return %arg0, %c0_i32, %c0_i32_0, %c0_i32_1 : i32, i32, i32, i32
  }
}

</mosaic_0001>

<bundles_post_ra>
// kernel: deconv_block.1
= control target key start
LH: loop header
LB: loop body
LE: loop exit
PB: predicated region body
PF: predicated region fallthrough
CT: control target
= control target key end

     0   :  { %s2168_s15 = smov 0   ;;  %s3910_s0 = inlined_call_operand.vmem [shape: f32[2,18,18,4], index: 0, kind: input, shape index: {}]   ;;  %s3911_s1 = inlined_call_operand.vmem [shape: f32[36,32], index: 1, kind: input, shape index: {}]   ;;  %s3912_s2 = inlined_call_operand.vmem [shape: f32[1,8], index: 2, kind: input, shape index: {}]   ;;  %s3913_s3 = inlined_call_operand.vmem [shape: f32[1,8], index: 3, kind: input, shape index: {}]   ;;  %s3914_s4 = inlined_call_operand.vmem [shape: f32[2,16,16,32], index: 4, kind: output, shape index: {}]  }
   0x1 LB: > { %s1938_s16 = sadd.s32 4294967295, %s2133_s15   ;;  %p1942_p0 = scmp.ge.s32.totalorder %s2133_s15, 1  ;;  %s2133_s15 = sphi %s2168_s15, %s14_s15  }
   0x2   : > { %p162_p1 = scmp.lt.s32.totalorder %s2133_s15, 3 }
   0x4   : > { %p163_p2 = pnand %p1942_p0, %p162_p1 }
   0x6   : > { %166 = sbr.rel (%p163_p2) target bundleno = 862 (0x35e), region = 36 }
   0xd   : > { %p188_p3 = scmp.lt.s32.totalorder %s1938_s16, 1  ;;  %vm300_vm0 = vcmask 1046528   ;;  %s2135_s19 = smov 4   ;;  %vm477_vm1 = vcmask 1045504   ;;  %vm1256_vm2 = vcmask 31744   ;;  %vm1289_vm3 = vcmask 64512  }
   0xe   : > { %s2136_s20 = smov 8   ;;  %s2137_s21 = smov 12   ;;  %vm1622_vm4 = vcmask 1043456   ;;  %vm1322_vm5 = vcmask 97280   ;;  %vm1355_vm6 = vcmask 130048   ;;  %vm1388_vm7 = vcmask 162816  }
   0xf   : > { %s4170_s16 = smov (!%p188_p3, %s1938_s16), 1  ;;  %s2138_s22 = smov 16   ;;  %vm1421_vm8 = vcmask 195584   ;;  %vm1454_vm9 = vcmask 228352   ;;  %vm1487_vm10 = vcmask 261120   ;;  %vm1525_vm11 = vcmask 293888  }
  0x10   : > { %s2091_s2 = smul.u32 432, %s4170_s16  ;;  %s2139_s23 = smov 20  }
  0x11   : > { %s2140_s24 = smov 24   ;;  %s2141_s29 = smov 28  }
  0x12   : > { %s2182_s18 = scalar_lea.vmem %s3910_s0, %s2091_s2  ;;  %s2142_s10 = smov 32  }
  0x13   : > { %v2185_v0 = vld [vmem:[%s2182_s18 + $0x18] sm:$0xff]  ;;  %v2188_v1 = vld [vmem:[%s2182_s18 + $0x20] sm:$0xff]  ;;  %v2196_v5 = vld [vmem:[%s2182_s18 + $0x8] sm:$0xff]  ;;  %s1981_s11 = sshll.u32 %s4170_s16, 8 }
  0x14   : > { %v2191_v2 = vld [vmem:[%s2182_s18] sm:$0xff]  ;;  %v306_v3 = vrot.slane %v2185_v0, 1  ;;  %v307_v4 = vrot.slane %v2188_v1, 1  ;;  %v2200_v7 = vld [vmem:[%s2182_s18 + $0x28] sm:$0x3]  ;;  %v302_v8 = vrot.slane %v2196_v5, 1  ;;  %s3782_s14 = scalar_lea.vmem %s3914_s4, %s1981_s11 }
  0x15   : > { %v301_v6 = vrot.slane %v2191_v2, 1  ;;  %v309_v9 = vrot.slane %v2200_v7, 1  ;;  %v2205_v10 = vld [vmem:[%s2182_s18 + $0x10] sm:$0x3]  ;;  %v2208_v11 = vld [vmem:[%s2182_s18 + $0x38] sm:$0xff]  ;;  %v2238_v24 = vld [vmem:[%s2182_s18 + $0x48] sm:$0xff] }
  0x16   : > { %v2211_v12 = vsel %vm300_vm0, %v306_v3, %v307_v4  ;;  %v304_v13 = vrot.slane %v2205_v10, 1  ;;  %v2215_v14 = vld [vmem:[%s2182_s18 + $0x40] sm:$0x3]  ;;  %v2218_v15 = vld [vmem:[%s2182_s18 + $0x30] sm:$0xff]  ;;  %v312_v18 = vrot.slane %v2208_v11, 1  ;;  %v316_v29 = vrot.slane %v2238_v24, 1 }
  0x17   : > { %385 = vrot.lane.b32.xlu1 %v2211_v12, %s2135_s19  ;;  %v303_v16 = vsel %vm300_vm0, %v301_v6, %v302_v8  ;;  %v2225_v17 = vsel %vm300_vm0, %v307_v4, %v309_v9  ;;  %v314_v19 = vrot.slane %v2215_v14, 1  ;;  %v311_v21 = vrot.slane %v2218_v15, 1  ;;  %v2232_v22 = vld [vmem:[%s2182_s18 + $0x50] sm:$0xff]  ;;  %v2235_v23 = vld [vmem:[%s2182_s18 + $0x58] sm:$0x3]  ;;  %v2253_v30 = vld [vmem:[%s2182_s18 + $0x68] sm:$0xff] }
  0x18   : > { %381 = vrot.lane.b32.xlu0 %v303_v16, %s2135_s19  ;;  %v305_v20 = vsel %vm300_vm0, %v302_v8, %v304_v13  ;;  %v317_v26 = vrot.slane %v2232_v22, 1  ;;  %v319_v27 = vrot.slane %v2235_v23, 1  ;;  %v2256_v31 = vld [vmem:[%s2182_s18 + $0x70] sm:$0x3]  ;;  %v2259_v32 = vld [vmem:[%s2182_s18 + $0x60] sm:$0xff]  ;;  %v322_v34 = vrot.slane %v2253_v30, 1 }
  0x19   : > { %v2244_v25 = vsel %vm300_vm0, %v312_v18, %v314_v19  ;;  %v2249_v28 = vsel %vm300_vm0, %v311_v21, %v312_v18  ;;  %v324_v35 = vrot.slane %v2256_v31, 1  ;;  %v321_v37 = vrot.slane %v2259_v32, 1  ;;  %v2275_v38 = vld [vmem:[%s2182_s18 + $0x80] sm:$0xff]  ;;  %v2278_v39 = vld [vmem:[%s2182_s18 + $0x88] sm:$0x3]  ;;  %v2281_v40 = vld [vmem:[%s2182_s18 + $0x78] sm:$0xff] }
  0x1a   : > { %v2266_v33 = vsel %vm300_vm0, %v317_v26, %v319_v27  ;;  %v2271_v36 = vsel %vm300_vm0, %v316_v29, %v317_v26  ;;  %v327_v42 = vrot.slane %v2275_v38, 1  ;;  %v329_v43 = vrot.slane %v2278_v39, 1  ;;  %v2297_v46 = vld [vmem:[%s2182_s18 + $0x98] sm:$0xff]  ;;  %v2300_v47 = vld [vmem:[%s2182_s18 + $0xa0] sm:$0x3]  ;;  %v2303_v48 = vld [vmem:[%s2182_s18 + $0x90] sm:$0xff] }
  0x1b   : > { %387 = vrot.lane.b32.xlu1 %v2225_v17, %s2135_s19  ;;  %4017 = vst [vmem:[#allocation2_spill] sm:$0xff] %v2271_v36  ;;  %v2288_v41 = vsel %vm300_vm0, %v322_v34, %v324_v35  ;;  %v2293_v44 = vsel %vm300_vm0, %v321_v37, %v322_v34  ;;  %v326_v45 = vrot.slane %v2281_v40, 1  ;;  %v332_v50 = vrot.slane %v2297_v46, 1  ;;  %v2319_v54 = vld [vmem:[%s2182_s18 + $0xb0] sm:$0xff]  ;;  %v2322_v55 = vld [vmem:[%s2182_s18 + $0xb8] sm:$0x3] }
  0x1c   : > { %383 = vrot.lane.b32.xlu0 %v305_v20, %s2135_s19  ;;  %4018 = vst [vmem:[#allocation3_spill] sm:$0xff] %v2288_v41  ;;  %4019 = vst [vmem:[#allocation4_spill] sm:$0xff] %v2293_v44  ;;  %v2310_v49 = vsel %vm300_vm0, %v327_v42, %v329_v43  ;;  %v334_v51 = vrot.slane %v2300_v47, 1  ;;  %v331_v53 = vrot.slane %v2303_v48, 1  ;;  %v2325_v56 = vld [vmem:[%s2182_s18 + $0xa8] sm:$0xff]  ;;  %v337_v58 = vrot.slane %v2319_v54, 1 }
  0x1d   : > { %4020 = vst [vmem:[#allocation5_spill] sm:$0xff] %v2310_v49  ;;  %v2315_v52 = vsel %vm300_vm0, %v326_v45, %v327_v42  ;;  %v339_v59 = vrot.slane %v2322_v55, 1  ;;  %v336_v61 = vrot.slane %v2325_v56, 1  ;;  %v2341_v62 = vld [vmem:[%s2182_s18 + $0xc8] sm:$0xff]  ;;  %v2344_v63 = vld [vmem:[%s2182_s18 + $0xd0] sm:$0x3] }
  0x1e   : > { %4021 = vst [vmem:[#allocation6_spill] sm:$0xff] %v2315_v52  ;;  %v2332_v57 = vsel %vm300_vm0, %v332_v50, %v334_v51  ;;  %v2337_v60 = vsel %vm300_vm0, %v331_v53, %v332_v50  ;;  %v2347_v3 = vld [vmem:[%s2182_s18 + $0xc0] sm:$0xff]  ;;  %v342_v6 = vrot.slane %v2341_v62, 1  ;;  %v344_v8 = vrot.slane %v2344_v63, 1  ;;  %v2366_v18 = vld [vmem:[%s2182_s18 + $0xe8] sm:$0x3] }
  0x1f   : > { %391 = vrot.lane.b32.xlu1 %v2244_v25, %s2135_s19  ;;  %4022 = vst [vmem:[#allocation7_spill] sm:$0xff] %v2332_v57  ;;  %4023 = vst [vmem:[#allocation8_spill] sm:$0xff] %v2337_v60  ;;  %v2354_v4 = vsel %vm300_vm0, %v337_v58, %v339_v59  ;;  %v2359_v9 = vsel %vm300_vm0, %v336_v61, %v337_v58  ;;  %v341_v13 = vrot.slane %v2347_v3, 1  ;;  %v2363_v16 = vld [vmem:[%s2182_s18 + $0xe0] sm:$0xff]  ;;  %v2369_v19 = vld [vmem:[%s2182_s18 + $0xd8] sm:$0xff]  ;;  %v349_v26 = vrot.slane %v2366_v18, 1 }
  0x20   : > { %389 = vrot.lane.b32.xlu0 %v2249_v28, %s2135_s19  ;;  %4024 = vst [vmem:[#allocation9_spill] sm:$0xff] %v2354_v4  ;;  %4025 = vst [vmem:[#allocation10_spill] sm:$0xff] %v2359_v9  ;;  %v2376_v20 = vsel %vm300_vm0, %v342_v6, %v344_v8  ;;  %v347_v21 = vrot.slane %v2363_v16, 1  ;;  %v346_v29 = vrot.slane %v2369_v19, 1  ;;  %v2385_v34 = vld [vmem:[%s2182_s18 + $0xf8] sm:$0xff]  ;;  %v2391_v37 = vld [vmem:[%s2182_s18 + $0xf0] sm:$0xff] }
  0x21   : > { %4026 = vst [vmem:[#allocation11_spill] sm:$0xff] %v2376_v20  ;;  %v2381_v27 = vsel %vm300_vm0, %v341_v13, %v342_v6  ;;  %v2388_v35 = vld [vmem:[%s2182_s18 + $0x100] sm:$0x3]  ;;  %v352_v43 = vrot.slane %v2385_v34, 1  ;;  %v351_v51 = vrot.slane %v2391_v37, 1  ;;  %v2407_v53 = vld [vmem:[%s2182_s18 + $0x110] sm:$0xff] }
  0x22   : > { %4027 = vst [vmem:[#allocation12_spill] sm:$0xff] %v2381_v27  ;;  %v2398_v42 = vsel %vm300_vm0, %v347_v21, %v349_v26  ;;  %v354_v45 = vrot.slane %v2388_v35, 1  ;;  %v2403_v50 = vsel %vm300_vm0, %v346_v29, %v347_v21  ;;  %v2410_v58 = vld [vmem:[%s2182_s18 + $0x118] sm:$0x3]  ;;  %v2413_v59 = vld [vmem:[%s2182_s18 + $0x108] sm:$0xff]  ;;  %v357_v6 = vrot.slane %v2407_v53, 1 }
  0x23   : > { %395 = vrot.lane.b32.xlu1 %v2266_v33, %s2135_s19  ;;  %4028 = vst [vmem:[#allocation13_spill] sm:$0xff] %v2398_v42  ;;  %4029 = vst [vmem:[#allocation14_spill] sm:$0xff] %v2403_v50  ;;  %v359_v8 = vrot.slane %v2410_v58, 1  ;;  %v2425_v13 = vsel %vm300_vm0, %v351_v51, %v352_v43  ;;  %v356_v21 = vrot.slane %v2413_v59, 1  ;;  %v2429_v26 = vld [vmem:[%s2182_s18 + $0x128] sm:$0xff] }
  0x24   : > { %393 = vrot.lane.b32.xlu0 %v2271_v36, %s2135_s19  ;;  %v2420_v61 = vsel %vm300_vm0, %v352_v43, %v354_v45  ;;  %4031 = vst [vmem:[#allocation16_spill] sm:$0xff] %v2425_v13  ;;  %v2432_v29 = vld [vmem:[%s2182_s18 + $0x130] sm:$0x3]  ;;  %v362_v43 = vrot.slane %v2429_v26, 1 }
  0x25   : > { %4030 = vst [vmem:[#allocation15_spill] sm:$0xff] %v2420_v61  ;;  %v2442_v45 = vsel %vm300_vm0, %v357_v6, %v359_v8  ;;  %v364_v51 = vrot.slane %v2432_v29, 1 }
  0x26   : > { %4032 = vst [vmem:[#allocation17_spill] sm:$0xff] %v2442_v45 }
  0x27   : > { %399 = vrot.lane.b32.xlu1 %v2288_v41, %s2135_s19  ;;  %v2464_v8 = vsel %vm300_vm0, %v362_v43, %v364_v51 }
  0x28   : > { %397 = vrot.lane.b32.xlu0 %v2293_v44, %s2135_s19  ;;  %4034 = vst [vmem:[#allocation19_spill] sm:$0xff] %v2464_v8  ;;  %v2498_v44 = vld [vmem:[%s2182_s18 + $0x178] sm:$0x3] }
  0x2b   : > { %403 = vrot.lane.b32.xlu1 %v2310_v49, %s2135_s19 }
  0x2c   : > { %401 = vrot.lane.b32.xlu0 %v2315_v52, %s2135_s19 }
  0x2f   : > { %407 = vrot.lane.b32.xlu1 %v2332_v57, %s2135_s19  ;;  %v2454_v57 = vld [vmem:[%s2182_s18 + $0x148] sm:$0x3] }
  0x30   : > { %405 = vrot.lane.b32.xlu0 %v2337_v60, %s2135_s19  ;;  %v2457_v60 = vld [vmem:[%s2182_s18 + $0x138] sm:$0xff] }
  0x31   : > { %v366_v52 = vrot.slane %v2457_v60, 1 }
  0x33   : > { %411 = vrot.lane.b32.xlu1 %v2354_v4, %s2135_s19 }
  0x34   : > { %409 = vrot.lane.b32.xlu0 %v2359_v9, %s2135_s19  ;;  %v2451_v9 = vld [vmem:[%s2182_s18 + $0x140] sm:$0xff] }
  0x37   : > { %415 = vrot.lane.b32.xlu1 %v2376_v20, %s2135_s19  ;;  %v2435_v20 = vld [vmem:[%s2182_s18 + $0x120] sm:$0xff] }
  0x38   : > { %413 = vrot.lane.b32.xlu0 %v2381_v27, %s2135_s19  ;;  %v2447_v27 = vsel %vm300_vm0, %v356_v21, %v357_v6  ;;  %v361_v4 = vrot.slane %v2435_v20, 1  ;;  %v367_v6 = vrot.slane %v2451_v9, 1  ;;  %v369_v21 = vrot.slane %v2454_v57, 1 }
  0x39   : > { %4033 = vst [vmem:[#allocation18_spill] sm:$0xff] %v2447_v27 }
  0x3a   : > { %v2469_v49 = vsel %vm300_vm0, %v361_v4, %v362_v43  ;;  %v2486_v51 = vsel %vm300_vm0, %v367_v6, %v369_v21 }
  0x3b   : > { %419 = vrot.lane.b32.xlu1 %v2398_v42, %s2135_s19  ;;  %4035 = vst [vmem:[#allocation20_spill] sm:$0xff] %v2469_v49  ;;  %4036 = vst [vmem:[#allocation21_spill] sm:$0xff] %v2486_v51  ;;  %v2495_v42 = vld [vmem:[%s2182_s18 + $0x170] sm:$0xff] }
  0x3c   : > { %417 = vrot.lane.b32.xlu0 %v2403_v50, %s2135_s19  ;;  %4038 = vst [vmem:[#allocation23_spill] sm:$0xff] %v2495_v42 }
  0x3f   : > { %423 = vrot.lane.b32.xlu1 %v2420_v61, %s2135_s19  ;;  %v2473_v61 = vld [vmem:[%s2182_s18 + $0x158] sm:$0xff] }
  0x40   : > { %421 = vrot.lane.b32.xlu0 %v2425_v13, %s2135_s19  ;;  %v372_v4 = vrot.slane %v2473_v61, 1  ;;  %v2491_v13 = vsel %vm300_vm0, %v366_v52, %v367_v6  ;;  %v377_v52 = vrot.slane %v2495_v42, 1  ;;  %v379_v6 = vrot.slane %v2498_v44, 1 }
  0x41   : > { %4037 = vst [vmem:[#allocation22_spill] sm:$0xff] %v2491_v13 }
  0x43   : > { %427 = vrot.lane.b32.xlu1 %v2442_v45, %s2135_s19  ;;  %v2476_v45 = vld [vmem:[%s2182_s18 + $0x160] sm:$0x3] }
  0x44   : > { %425 = vrot.lane.b32.xlu0 %v2447_v27, %s2135_s19  ;;  %v2479_v27 = vld [vmem:[%s2182_s18 + $0x150] sm:$0xff]  ;;  %v374_v43 = vrot.slane %v2476_v45, 1 }
  0x45   : > { %v371_v50 = vrot.slane %v2479_v27, 1 }
  0x46   : > { %v2508_v21 = vsel %vm300_vm0, %v372_v4, %v374_v43  ;;  %v479_v43 = vrot.slane %v2196_v5, 2  ;;  %v486_v5 = vrot.slane %v2200_v7, 2  ;;  %v488_v7 = vrot.slane %v2218_v15, 2 }
  0x47   : > { %431 = vrot.lane.b32.xlu1 %v2464_v8, %s2135_s19  ;;  %v2501_v8 = vld [vmem:[%s2182_s18 + $0x168] sm:$0xff]  ;;  %4040 = vst [vmem:[#allocation25_spill] sm:$0xff] %v2508_v21 }
  0x48   : > { %429 = vrot.lane.b32.xlu0 %v2469_v49, %s2135_s19  ;;  %4039 = vst [vmem:[#allocation24_spill] sm:$0xff] %v2501_v8  ;;  %v2513_v49 = vsel %vm300_vm0, %v371_v50, %v372_v4  ;;  %v376_v41 = vrot.slane %v2501_v8, 1  ;;  %v478_v50 = vrot.slane %v2191_v2, 2 }
  0x49   : > { %4041 = vst [vmem:[#allocation26_spill] sm:$0xff] %v2513_v49 }
  0x4a   : > { %v2526_v36 = vsel %vm300_vm0, %v376_v41, %v377_v52  ;;  %v483_v41 = vrot.slane %v2185_v0, 2 }
  0x4b   : > { %435 = vrot.lane.b32.xlu1 %v2486_v51, %s2135_s19  ;;  %v2521_v51 = vsel %vm300_vm0, %v377_v52, %v379_v6  ;;  %4043 = vst [vmem:[#allocation28_spill] sm:$0xff] %v2526_v36  ;;  %v484_v6 = vrot.slane %v2188_v1, 2  ;;  %v489_v52 = vrot.slane %v2208_v11, 2 }
  0x4c   : > { %433 = vrot.lane.b32.xlu0 %v2491_v13, %s2135_s19  ;;  %4042 = vst [vmem:[#allocation27_spill] sm:$0xff] %v2521_v51  ;;  %v481_v13 = vrot.slane %v2205_v10, 2  ;;  %v480_v10 = vsel %vm477_vm1, %v478_v50, %v479_v43  ;;  %v494_v50 = vrot.slane %v2232_v22, 2 }
  0x4d   : > { %v2541_v2 = vsel %vm477_vm1, %v484_v6, %v486_v5 }
  0x4e   : > { %v482_v4 = vsel %vm477_vm1, %v479_v43, %v481_v13  ;;  %v491_v13 = vrot.slane %v2215_v14, 2  ;;  %v2559_v14 = vsel %vm477_vm1, %v488_v7, %v489_v52  ;;  %v504_v7 = vrot.slane %v2275_v38, 2 }
  0x4f   : > { %439 = vrot.lane.b32.xlu1 %v2508_v21, %s2135_s19  ;;  %v516_v21 = vrot.slane %v2322_v55, 2 }
  0x50   : > { %437 = vrot.lane.b32.xlu0 %v2513_v49, %s2135_s19  ;;  %v2554_v43 = vsel %vm477_vm1, %v489_v52, %v491_v13  ;;  %v498_v52 = vrot.slane %v2259_v32, 2  ;;  %v521_v49 = vrot.slane %v2344_v63, 2 }
  0x51   : > { %4044 = vst [vmem:[#allocation29_spill] sm:$0xff] %v2554_v43 }
  0x53   : > { %443 = vrot.lane.b32.xlu1 %v2521_v51, %s2135_s19  ;;  %v2546_v51 = vsel %vm477_vm1, %v483_v41, %v484_v6  ;;  %v493_v6 = vrot.slane %v2238_v24, 2  ;;  %v501_v41 = vrot.slane %v2256_v31, 2 }
  0x54   : > { %441 = vrot.lane.b32.xlu0 %v2526_v36, %s2135_s19  ;;  %v511_v36 = vrot.slane %v2300_v47, 2 }
  0x57   : > { %560 = vrot.lane.b32.xlu1 %v482_v4, %s2136_s20  ;;  %v496_v4 = vrot.slane %v2235_v23, 2  ;;  %v2572_v23 = vsel %vm477_vm1, %v493_v6, %v494_v50 }
  0x58   : > { %558 = vrot.lane.b32.xlu0 %v480_v10, %s2136_s20  ;;  %v499_v10 = vrot.slane %v2253_v30, 2  ;;  %4046 = vst [vmem:[#allocation31_spill] sm:$0xff] %v2572_v23 }
  0x59   : > { %v2567_v5 = vsel %vm477_vm1, %v494_v50, %v496_v4  ;;  %v506_v4 = vrot.slane %v2278_v39, 2  ;;  %v503_v50 = vrot.slane %v2281_v40, 2 }
  0x5a   : > { %4045 = vst [vmem:[#allocation30_spill] sm:$0xff] %v2567_v5  ;;  %v2580_v13 = vsel %vm477_vm1, %v499_v10, %v501_v41  ;;  %v2585_v31 = vsel %vm477_vm1, %v498_v52, %v499_v10  ;;  %v509_v41 = vrot.slane %v2297_v46, 2  ;;  %v508_v10 = vrot.slane %v2303_v48, 2 }
  0x5b   : > { %564 = vrot.lane.b32.xlu1 %v2541_v2, %s2136_s20  ;;  %4047 = vst [vmem:[#allocation32_spill] sm:$0xff] %v2580_v13  ;;  %4048 = vst [vmem:[#allocation33_spill] sm:$0xff] %v2585_v31  ;;  %v2593_v6 = vsel %vm477_vm1, %v504_v7, %v506_v4  ;;  %v2598_v39 = vsel %vm477_vm1, %v503_v50, %v504_v7  ;;  %v514_v4 = vrot.slane %v2319_v54, 2  ;;  %v513_v7 = vrot.slane %v2325_v56, 2 }
  0x5c   : > { %562 = vrot.lane.b32.xlu0 %v2546_v51, %s2136_s20  ;;  %4049 = vst [vmem:[#allocation34_spill] sm:$0xff] %v2593_v6  ;;  %4050 = vst [vmem:[#allocation35_spill] sm:$0xff] %v2598_v39  ;;  %v2606_v52 = vsel %vm477_vm1, %v509_v41, %v511_v36  ;;  %v2611_v47 = vsel %vm477_vm1, %v508_v10, %v509_v41  ;;  %v519_v36 = vrot.slane %v2341_v62, 2  ;;  %v518_v41 = vrot.slane %v2347_v3, 2 }
  0x5d   : > { %4051 = vst [vmem:[#allocation36_spill] sm:$0xff] %v2606_v52  ;;  %4052 = vst [vmem:[#allocation37_spill] sm:$0xff] %v2611_v47  ;;  %v2619_v50 = vsel %vm477_vm1, %v514_v4, %v516_v21  ;;  %v2624_v55 = vsel %vm477_vm1, %v513_v7, %v514_v4  ;;  %v524_v21 = vrot.slane %v2363_v16, 2  ;;  %v523_v4 = vrot.slane %v2369_v19, 2 }
  0x5e   : > { %4053 = vst [vmem:[#allocation38_spill] sm:$0xff] %v2619_v50  ;;  %4054 = vst [vmem:[#allocation39_spill] sm:$0xff] %v2624_v55  ;;  %v2632_v10 = vsel %vm477_vm1, %v519_v36, %v521_v49  ;;  %v2637_v63 = vsel %vm477_vm1, %v518_v41, %v519_v36  ;;  %v529_v49 = vrot.slane %v2385_v34, 2  ;;  %v528_v36 = vrot.slane %v2391_v37, 2 }
  0x5f   : > { %568 = vrot.lane.b32.xlu1 %v2554_v43, %s2136_s20  ;;  %4055 = vst [vmem:[#allocation40_spill] sm:$0xff] %v2632_v10  ;;  %4056 = vst [vmem:[#allocation41_spill] sm:$0xff] %v2637_v63 }
  0x60   : > { %566 = vrot.lane.b32.xlu0 %v2559_v14, %s2136_s20 }
  0x63   : > { %572 = vrot.lane.b32.xlu1 %v2567_v5, %s2136_s20 }
  0x64   : > { %570 = vrot.lane.b32.xlu0 %v2572_v23, %s2136_s20 }
  0x67   : > { %576 = vrot.lane.b32.xlu1 %v2580_v13, %s2136_s20 }
  0x68   : > { %574 = vrot.lane.b32.xlu0 %v2585_v31, %s2136_s20 }
  0x6b   : > { %580 = vrot.lane.b32.xlu1 %v2593_v6, %s2136_s20 }
  0x6c   : > { %578 = vrot.lane.b32.xlu0 %v2598_v39, %s2136_s20 }
  0x6f   : > { %584 = vrot.lane.b32.xlu1 %v2606_v52, %s2136_s20  ;;  %v526_v52 = vrot.slane %v2366_v18, 2  ;;  %v2650_v18 = vsel %vm477_vm1, %v523_v4, %v524_v21 }
  0x70   : > { %582 = vrot.lane.b32.xlu0 %v2611_v47, %s2136_s20  ;;  %v551_v47 = vrot.slane %v2476_v45, 2  ;;  %v554_v45 = vrot.slane %v2495_v42, 2 }
  0x71   : > { %v2645_v7 = vsel %vm477_vm1, %v524_v21, %v526_v52  ;;  %v534_v52 = vrot.slane %v2407_v53, 2  ;;  %v533_v21 = vrot.slane %v2413_v59, 2 }
  0x73   : > { %588 = vrot.lane.b32.xlu1 %v2619_v50, %s2136_s20  ;;  %v531_v50 = vrot.slane %v2388_v35, 2  ;;  %v2663_v35 = vsel %vm477_vm1, %v528_v36, %v529_v49 }
  0x74   : > { %586 = vrot.lane.b32.xlu0 %v2624_v55, %s2136_s20  ;;  %4058 = vst [vmem:[#allocation43_spill] sm:$0xff] %v2663_v35  ;;  %v546_v55 = vrot.slane %v2454_v57, 2 }
  0x75   : > { %v2658_v41 = vsel %vm477_vm1, %v529_v49, %v531_v50  ;;  %v539_v50 = vrot.slane %v2429_v26, 2  ;;  %v538_v49 = vrot.slane %v2435_v20, 2 }
  0x76   : > { %4057 = vst [vmem:[#allocation42_spill] sm:$0xff] %v2658_v41 }
  0x77   : > { %592 = vrot.lane.b32.xlu1 %v2632_v10, %s2136_s20  ;;  %v536_v10 = vrot.slane %v2410_v58, 2  ;;  %v2676_v58 = vsel %vm477_vm1, %v533_v21, %v534_v52 }
  0x78   : > { %590 = vrot.lane.b32.xlu0 %v2637_v63, %s2136_s20  ;;  %v541_v63 = vrot.slane %v2432_v29, 2  ;;  %4060 = vst [vmem:[#allocation45_spill] sm:$0xff] %v2676_v58  ;;  %v2689_v29 = vsel %vm477_vm1, %v538_v49, %v539_v50 }
  0x79   : > { %v2671_v4 = vsel %vm477_vm1, %v534_v52, %v536_v10  ;;  %v544_v10 = vrot.slane %v2451_v9, 2  ;;  %4062 = vst [vmem:[#allocation47_spill] sm:$0xff] %v2689_v29  ;;  %v543_v52 = vrot.slane %v2457_v60, 2 }
  0x7a   : > { %4059 = vst [vmem:[#allocation44_spill] sm:$0xff] %v2671_v4  ;;  %v2684_v36 = vsel %vm477_vm1, %v539_v50, %v541_v63  ;;  %v549_v63 = vrot.slane %v2473_v61, 2  ;;  %v548_v50 = vrot.slane %v2479_v27, 2 }
  0x7b   : > { %596 = vrot.lane.b32.xlu1 %v2645_v7, %s2136_s20  ;;  %4061 = vst [vmem:[#allocation46_spill] sm:$0xff] %v2684_v36  ;;  %v2697_v21 = vsel %vm477_vm1, %v544_v10, %v546_v55  ;;  %v2704_v57 = vsel %vm477_vm1, %v543_v52, %v544_v10  ;;  %v553_v52 = vrot.slane %v2501_v8, 2 }
  0x7c   : > { %594 = vrot.lane.b32.xlu0 %v2650_v18, %s2136_s20  ;;  %4063 = vst [vmem:[#allocation48_spill] sm:$0xff] %v2697_v21  ;;  %4065 = vst [vmem:[#allocation50_spill] sm:$0xff] %v2704_v57  ;;  %v2714_v55 = vsel %vm477_vm1, %v549_v63, %v551_v47  ;;  %v2721_v10 = vsel %vm477_vm1, %v548_v50, %v549_v63 }
  0x7d   : > { %4067 = vst [vmem:[#allocation52_spill] sm:$0xff] %v2714_v55  ;;  %4069 = vst [vmem:[#allocation54_spill] sm:$0xff] %v2721_v10 }
  0x7f   : > { %600 = vrot.lane.b32.xlu1 %v2658_v41, %s2136_s20 }
  0x80   : > { %598 = vrot.lane.b32.xlu0 %v2663_v35, %s2136_s20  ;;  %v2871_v35 = vld [vmem:[%s2182_s18 + $0x180] sm:$0xff] }
  0x83   : > { %604 = vrot.lane.b32.xlu1 %v2671_v4, %s2136_s20 }
  0x84   : > { %602 = vrot.lane.b32.xlu0 %v2676_v58, %s2136_s20 }
  0x87   : > { %608 = vrot.lane.b32.xlu1 %v2684_v36, %s2136_s20 }
  0x88   : > { %606 = vrot.lane.b32.xlu0 %v2689_v29, %s2136_s20 }
  0x89   : > { %v2701_v6 = vpop.permute.xlu1 %385 }
  0x8a   : > { %4064 = vst [vmem:[#allocation49_spill] sm:$0xff] %v2701_v6  ;;  %v2707_v49 = vpop.permute.xlu0 %381  ;;  %v556_v6 = vrot.slane %v2498_v44, 2  ;;  %v2736_v44 = vsel %vm477_vm1, %v553_v52, %v554_v45 }
  0x8b   : > { %4066 = vst [vmem:[#allocation51_spill] sm:$0xff] %v2707_v49  ;;  %612 = vrot.lane.b32.xlu1 %v2697_v21, %s2136_s20  ;;  %4072 = vst [vmem:[#allocation57_spill] sm:$0xff] %v2736_v44 }
  0x8c   : > { %610 = vrot.lane.b32.xlu0 %v2704_v57, %s2136_s20  ;;  %v2731_v47 = vsel %vm477_vm1, %v554_v45, %v556_v6 }
  0x8d   : > { %v2718_v39 = vpop.permute.xlu1 %387  ;;  %4071 = vst [vmem:[#allocation56_spill] sm:$0xff] %v2731_v47 }
  0x8e   : > { %4068 = vst [vmem:[#allocation53_spill] sm:$0xff] %v2718_v39  ;;  %v2724_v49 = vpop.permute.xlu0 %383 }
  0x8f   : > { %4070 = vst [vmem:[#allocation55_spill] sm:$0xff] %v2724_v49  ;;  %616 = vrot.lane.b32.xlu1 %v2714_v55, %s2136_s20 }
  0x90   : > { %614 = vrot.lane.b32.xlu0 %v2721_v10, %s2136_s20 }
  0x91   : > { %v2733_v21 = vpop.permute.xlu1 %391 }
  0x92   : > { %v2738_v63 = vpop.permute.xlu0 %389 }
  0x93   : > { %620 = vrot.lane.b32.xlu1 %v2731_v47, %s2136_s20 }
  0x94   : > { %618 = vrot.lane.b32.xlu0 %v2736_v44, %s2136_s20 }
  0x95   : > { %v2744_v50 = vpop.permute.xlu1 %395 }
  0x96   : > { %v2746_v55 = vpop.permute.xlu0 %393 }
  0x97   : > { %658 = vrot.lane.b32.xlu1 %v2188_v1, %s2137_s21 }
  0x98   : > { %656 = vrot.lane.b32.xlu0 %v2185_v0, %s2137_s21 }
  0x99   : > { %v2752_v6 = vpop.permute.xlu1 %399 }
  0x9a   : > { %v2754_v45 = vpop.permute.xlu0 %397 }
  0x9b   : > { %662 = vrot.lane.b32.xlu1 %v2208_v11, %s2137_s21 }
  0x9c   : > { %660 = vrot.lane.b32.xlu0 %v2218_v15, %s2137_s21 }
  0x9d   : > { %v2760_v52 = vpop.permute.xlu1 %403 }
  0x9e   : > { %v2762_v47 = vpop.permute.xlu0 %401 }
  0x9f   : > { %666 = vrot.lane.b32.xlu1 %v2232_v22, %s2137_s21 }
  0xa0   : > { %664 = vrot.lane.b32.xlu0 %v2238_v24, %s2137_s21 }
  0xa1   : > { %v2768_v0 = vpop.permute.xlu1 %407 }
  0xa2   : > { %v2770_v1 = vpop.permute.xlu0 %405 }
  0xa3   : > { %670 = vrot.lane.b32.xlu1 %v2253_v30, %s2137_s21 }
  0xa4   : > { %668 = vrot.lane.b32.xlu0 %v2259_v32, %s2137_s21 }
  0xa5   : > { %v2776_v44 = vpop.permute.xlu1 %411 }
  0xa6   : > { %v2778_v39 = vpop.permute.xlu0 %409 }
  0xa7   : > { %674 = vrot.lane.b32.xlu1 %v2275_v38, %s2137_s21 }
  0xa8   : > { %672 = vrot.lane.b32.xlu0 %v2281_v40, %s2137_s21 }
  0xa9   : > { %v2784_v10 = vpop.permute.xlu1 %415 }
  0xaa   : > { %4073 = vst [vmem:[#allocation58_spill] sm:$0xff] %v2784_v10  ;;  %v2786_v49 = vpop.permute.xlu0 %413 }
  0xab   : > { %4074 = vst [vmem:[#allocation59_spill] sm:$0xff] %v2786_v49  ;;  %678 = vrot.lane.b32.xlu1 %v2297_v46, %s2137_s21 }
  0xac   : > { %676 = vrot.lane.b32.xlu0 %v2303_v48, %s2137_s21 }
  0xad   : > { %v2792_v57 = vpop.permute.xlu1 %419 }
  0xae   : > { %4075 = vst [vmem:[#allocation60_spill] sm:$0xff] %v2792_v57  ;;  %v2794_v13 = vpop.permute.xlu0 %417 }
  0xaf   : > { %4076 = vst [vmem:[#allocation61_spill] sm:$0xff] %v2794_v13  ;;  %682 = vrot.lane.b32.xlu1 %v2319_v54, %s2137_s21 }
  0xb0   : > { %680 = vrot.lane.b32.xlu0 %v2325_v56, %s2137_s21 }
  0xb1   : > { %v2800_v36 = vpop.permute.xlu1 %423 }
  0xb2   : > { %v2802_v10 = vpop.permute.xlu0 %421 }
  0xb3   : > { %686 = vrot.lane.b32.xlu1 %v2341_v62, %s2137_s21 }
  0xb4   : > { %684 = vrot.lane.b32.xlu0 %v2347_v3, %s2137_s21 }
  0xb5   : > { %v2808_v49 = vpop.permute.xlu1 %427 }
  0xb6   : > { %v2810_v57 = vpop.permute.xlu0 %425 }
  0xb7   : > { %690 = vrot.lane.b32.xlu1 %v2363_v16, %s2137_s21 }
  0xb8   : > { %688 = vrot.lane.b32.xlu0 %v2369_v19, %s2137_s21 }
  0xb9   : > { %v2816_v13 = vpop.permute.xlu1 %431 }
  0xba   : > { %v2818_v29 = vpop.permute.xlu0 %429 }
  0xbb   : > { %694 = vrot.lane.b32.xlu1 %v2385_v34, %s2137_s21 }
  0xbc   : > { %692 = vrot.lane.b32.xlu0 %v2391_v37, %s2137_s21 }
  0xbd   : > { %v2824_v62 = vpop.permute.xlu1 %435 }
  0xbe   : > { %v2826_v3 = vpop.permute.xlu0 %433 }
  0xbf   : > { %698 = vrot.lane.b32.xlu1 %v2407_v53, %s2137_s21 }
  0xc0   : > { %696 = vrot.lane.b32.xlu0 %v2413_v59, %s2137_s21 }
  0xc1   : > { %v2832_v16 = vpop.permute.xlu1 %439 }
  0xc2   : > { %v2834_v19 = vpop.permute.xlu0 %437 }
  0xc3   : > { %702 = vrot.lane.b32.xlu1 %v2429_v26, %s2137_s21 }
  0xc4   : > { %700 = vrot.lane.b32.xlu0 %v2435_v20, %s2137_s21 }
  0xc5   : > { %v2840_v31 = vpop.permute.xlu1 %443 }
  0xc6   : > { %v2842_v5 = vpop.permute.xlu0 %441 }
  0xc7   : > { %4077 = vst [vmem:[#allocation62_spill] sm:$0xff] %v2842_v5  ;;  %706 = vrot.lane.b32.xlu1 %v2451_v9, %s2137_s21 }
  0xc8   : > { %704 = vrot.lane.b32.xlu0 %v2457_v60, %s2137_s21 }
  0xc9   : > { %v2848_v4 = vpop.permute.xlu1 %560 }
  0xca   : > { %4078 = vst [vmem:[#allocation63_spill] sm:$0xff] %v2848_v4  ;;  %v2850_v58 = vpop.permute.xlu0 %558  ;;  %v2865_v4 = vld [vmem:[%s2182_s18 + $0x188] sm:$0xff] }
  0xcb   : > { %4079 = vst [vmem:[#allocation64_spill] sm:$0xff] %v2850_v58  ;;  %710 = vrot.lane.b32.xlu1 %v2473_v61, %s2137_s21  ;;  %v1262_v58 = vsel %vm1256_vm2, %v2208_v11, %v2733_v21  ;;  %v1264_v21 = vsel %vm1256_vm2, %v2232_v22, %v2744_v50 }
  0xcc   : > { %708 = vrot.lane.b32.xlu0 %v2479_v27, %s2137_s21 }
  0xcd   : > { %v2856_v23 = vpop.permute.xlu1 %564 }
  0xce   : > { %4080 = vst [vmem:[#allocation65_spill] sm:$0xff] %v2856_v23  ;;  %v2858_v43 = vpop.permute.xlu0 %562  ;;  %v1261_v23 = vsel %vm1256_vm2, %v2218_v15, %v2738_v63  ;;  %v1266_v63 = vsel %vm1256_vm2, %v2253_v30, %v2752_v6  ;;  %v1267_v30 = vsel %vm1256_vm2, %v2281_v40, %v2762_v47  ;;  %v1269_v40 = vsel %vm1256_vm2, %v2303_v48, %v2770_v1 }
  0xcf   : > { %4081 = vst [vmem:[#allocation66_spill] sm:$0xff] %v2858_v43  ;;  %714 = vrot.lane.b32.xlu1 %v2495_v42, %s2137_s21  ;;  %v1271_v48 = vsel %vm1256_vm2, %v2325_v56, %v2778_v39 }
  0xd0   : > { %712 = vrot.lane.b32.xlu0 %v2501_v8, %s2137_s21 }
  0xd1   : > { %v569_v41 = vpop.permute.xlu1 %568 }
  0xd2   : > { %v2877_v43 = vsel %vm1289_vm3, %v1262_v58, %v569_v41  ;;  %v567_v5 = vpop.permute.xlu0 %566  ;;  %v1263_v41 = vsel %vm1256_vm2, %v2238_v24, %v2746_v55 }
  0xd3   : > { %v2880_v8 = vsel %vm1289_vm3, %v1261_v23, %v567_v5  ;;  %718 = vrot.lane.b32.xlu1 %v2865_v4, %s2137_s21 }
  0xd4   : > { %716 = vrot.lane.b32.xlu0 %v2871_v35, %s2137_s21 }
  0xd5   : > { %v573_v42 = vpop.permute.xlu1 %572 }
  0xd6   : > { %v2893_v58 = vsel %vm1289_vm3, %v1264_v21, %v573_v42  ;;  %v571_v5 = vpop.permute.xlu0 %570  ;;  %v1265_v42 = vsel %vm1256_vm2, %v2259_v32, %v2754_v45 }
  0xd7   : > { %v2896_v23 = vsel %vm1289_vm3, %v1263_v41, %v571_v5  ;;  %760 = vrot.lane.b32.xlu1 %v2225_v17, %s2138_s22 }
  0xd8   : > { %758 = vrot.lane.b32.xlu0 %v2211_v12, %s2138_s22  ;;  %v1268_v12 = vsel %vm1256_vm2, %v2275_v38, %v2760_v52  ;;  %v1270_v38 = vsel %vm1256_vm2, %v2297_v46, %v2768_v0  ;;  %v1272_v46 = vsel %vm1256_vm2, %v2319_v54, %v2776_v44  ;;  %v1278_v44 = vsel %vm1256_vm2, %v2385_v34, %v2800_v36 }
  0xd9   : > { %v577_v50 = vpop.permute.xlu1 %576 }
  0xda   : > { %v2909_v55 = vsel %vm1289_vm3, %v1266_v63, %v577_v50  ;;  %v575_v21 = vpop.permute.xlu0 %574  ;;  %v4082_v63 = vld [vmem:[#allocation2_spill] sm:$0xff] }
  0xdb   : > { %v2912_v41 = vsel %vm1289_vm3, %v1265_v42, %v575_v21  ;;  %764 = vrot.lane.b32.xlu1 %v2244_v25, %s2138_s22  ;;  %v4083_v21 = vld [vmem:[#allocation3_spill] sm:$0xff] }
  0xdc   : > { %762 = vrot.lane.b32.xlu0 %v2249_v28, %s2138_s22 }
  0xdd   : > { %v581_v17 = vpop.permute.xlu1 %580 }
  0xde   : > { %v2925_v6 = vsel %vm1289_vm3, %v1268_v12, %v581_v17  ;;  %v579_v45 = vpop.permute.xlu0 %578  ;;  %v4084_v12 = vld [vmem:[#allocation4_spill] sm:$0xff] }
  0xdf   : > { %v2928_v5 = vsel %vm1289_vm3, %v1267_v30, %v579_v45  ;;  %768 = vrot.lane.b32.xlu1 %v2266_v33, %s2138_s22  ;;  %v4085_v45 = vld [vmem:[#allocation13_spill] sm:$0xff] }
  0xe0   : > { %766 = vrot.lane.b32.xlu0 %v4082_v63, %s2138_s22 }
  0xe1   : > { %v585_v52 = vpop.permute.xlu1 %584 }
  0xe2   : > { %v2941_v47 = vsel %vm1289_vm3, %v1270_v38, %v585_v52  ;;  %v583_v50 = vpop.permute.xlu0 %582  ;;  %v4086_v38 = vld [vmem:[#allocation14_spill] sm:$0xff] }
  0xe3   : > { %v2944_v42 = vsel %vm1289_vm3, %v1269_v40, %v583_v50  ;;  %772 = vrot.lane.b32.xlu1 %v4083_v21, %s2138_s22  ;;  %v1277_v50 = vsel %vm1256_vm2, %v2391_v37, %v2802_v10  ;;  %v1279_v10 = vsel %vm1256_vm2, %v2413_v59, %v2810_v57 }
  0xe4   : > { %770 = vrot.lane.b32.xlu0 %v4084_v12, %s2138_s22 }
  0xe5   : > { %v589_v0 = vpop.permute.xlu1 %588 }
  0xe6   : > { %v2957_v1 = vsel %vm1289_vm3, %v1272_v46, %v589_v0  ;;  %v587_v17 = vpop.permute.xlu0 %586 }
  0xe7   : > { %v2960_v30 = vsel %vm1289_vm3, %v1271_v48, %v587_v17  ;;  %792 = vrot.lane.b32.xlu1 %v4085_v45, %s2138_s22 }
  0xe8   : > { %790 = vrot.lane.b32.xlu0 %v4086_v38, %s2138_s22 }
  0xe9   : > { %v2966_v52 = vpop.permute.xlu1 %592 }
  0xea   : > { %v2968_v54 = vpop.permute.xlu0 %590 }
  0xeb   : > { %891 = vrot.lane.b32.xlu1 %v2650_v18, %s2139_s23 }
  0xec   : > { %859 = vrot.lane.b32.xlu0 %v2546_v51, %s2139_s23 }
  0xed   : > { %v2974_v56 = vpop.permute.xlu1 %596 }
  0xee   : > { %v2976_v39 = vpop.permute.xlu0 %594 }
  0xef   : > { %893 = vrot.lane.b32.xlu1 %v2645_v7, %s2139_s23 }
  0xf0   : > { %861 = vrot.lane.b32.xlu0 %v2541_v2, %s2139_s23  ;;  %v1280_v2 = vsel %vm1256_vm2, %v2407_v53, %v2808_v49  ;;  %v1282_v49 = vsel %vm1256_vm2, %v2429_v26, %v2816_v13  ;;  %v1522_v13 = vld [vmem:[%s3911_s1 + $0x10] sm:$0xff] }
  0xf1   : > { %v601_v40 = vpop.permute.xlu1 %600 }
  0xf2   : > { %v2989_v51 = vsel %vm1289_vm3, %v1278_v44, %v601_v40  ;;  %v599_v46 = vpop.permute.xlu0 %598 }
  0xf3   : > { %v2992_v0 = vsel %vm1289_vm3, %v1277_v50, %v599_v46  ;;  %989 = vrot.lane.b32.xlu1 %v2391_v37, %s2140_s24  ;;  %v1521_v37 = vld [vmem:[%s3911_s1 + $0x8] sm:$0xff] }
  0xf4   : > { %957 = vrot.lane.b32.xlu0 %v2218_v15, %s2140_s24  ;;  %v1520_v15 = vld [vmem:[%s3911_s1] sm:$0xff] }
  0xf5   : > { %v605_v36 = vpop.permute.xlu1 %604  ;;  %v2077_v57 = vpack.c.bf16 %v1521_v37, %v1520_v15  ;;  %v1283_v15 = vsel %vm1256_vm2, %v2457_v60, %v2826_v3 }
  0xf6   : > { %v3005_v48 = vsel %vm1289_vm3, %v1280_v2, %v605_v36  ;;  %v603_v17 = vpop.permute.xlu0 %602 }
  0xf7   : > { %v3008_v44 = vsel %vm1289_vm3, %v1279_v10, %v603_v17  ;;  %991 = vrot.lane.b32.xlu1 %v2385_v34, %s2140_s24  ;;  %v1281_v34 = vsel %vm1256_vm2, %v2435_v20, %v2818_v29  ;;  %2078 = vmatprep.subr.bf16.mxu0 %v2077_v57  ;;  %v1523_v29 = vld [vmem:[%s3911_s1 + $0x18] sm:$0xff]  ;;  %v1284_v10 = vsel %vm1256_vm2, %v2451_v9, %v2824_v62 }
  0xf8   : > { %959 = vrot.lane.b32.xlu0 %v2208_v11, %s2140_s24  ;;  %2085 = vmatprep.subr.bf16.mxu1 %v2077_v57  ;;  %v4087_v11 = vld [vmem:[#allocation16_spill] sm:$0xff]  ;;  %v2081_v36 = vpack.c.bf16 %v1523_v29, %v1522_v13  ;;  %v1286_v62 = vsel %vm1256_vm2, %v2473_v61, %v2832_v16  ;;  %v4088_v61 = vld [vmem:[#allocation15_spill] sm:$0xff] }
  0xf9   : > { %v609_v40 = vpop.permute.xlu1 %608  ;;  %2080 = vmatpush3.bf16.msra.mxu0 %v2077_v57  ;;  %2088 = vmatpush3.bf16.msra.mxu1 %v2077_v57  ;;  %v4089_v16 = vld [vmem:[#allocation23_spill] sm:$0xff]  ;;  %v4091_v13 = vld [vmem:[#allocation24_spill] sm:$0xff] }
  0xfa   : > { %v3027_v50 = vsel %vm1289_vm3, %v1282_v49, %v609_v40  ;;  %v607_v46 = vpop.permute.xlu0 %606  ;;  %2082 = vmatprep.subr.bf16.mxu0 %v2081_v36  ;;  %2086 = vmatprep.subr.bf16.mxu1 %v2081_v36 }
  0xfb   : > { %v3030_v2 = vsel %vm1289_vm3, %v1281_v34, %v607_v46  ;;  %1091 = vrot.lane.b32.xlu1 %v4087_v11, %s2141_s29 }
  0xfc   : > { %1059 = vrot.lane.b32.xlu0 %v2249_v28, %s2141_s29  ;;  %v1524_v28 = vld [vmem:[%s3911_s1 + $0x20] sm:$0xf] }
  0xfd   : > { %v613_v17 = vpop.permute.xlu1 %612  ;;  %2084 = vmatpush3.bf16.msra.mxu0 %v2081_v36  ;;  %2089 = vmatpush3.bf16.msra.mxu1 %v2081_v36 }
  0xfe   : > { %v3049_v37 = vsel %vm1289_vm3, %v1284_v10, %v613_v17  ;;  %v611_v49 = vpop.permute.xlu0 %610  ;;  %2027 = vmatprep.subr.msk.mxu0 %vm1622_vm4, %v1524_v28  ;;  %2087 = vmatprep.subr.msk.mxu1 %vm1622_vm4, %v1524_v28 }
  0xff   : > { %v3052_v40 = vsel %vm1289_vm3, %v1283_v15, %v611_v49  ;;  %1061 = vrot.lane.b32.xlu1 %v2244_v25, %s2141_s29  ;;  %v1285_v25 = vsel %vm1256_vm2, %v2479_v27, %v2834_v19  ;;  %v1288_v27 = vsel %vm1256_vm2, %v4089_v16, %v2840_v31  ;;  %v4092_v15 = vld [vmem:[#allocation43_spill] sm:$0xff] }
 0x100   : > { %794 = vrot.lane.b32.xlu0 %v4087_v11, %s2138_s22  ;;  %v4090_v11 = vld [vmem:[#allocation62_spill] sm:$0xff] }
 0x101   : > { %v617_v3 = vpop.permute.xlu1 %616  ;;  %2028 = vmatpush3.msk.msra.mxu0 %vm1622_vm4, %v1524_v28  ;;  %2090 = vmatpush3.msk.msra.mxu1 %vm1622_vm4, %v1524_v28  ;;  %v1287_v29 = vsel %vm1256_vm2, %v4091_v13, %v4090_v11 }
 0x102   : > { %v3068_v57 = vsel %vm1289_vm3, %v1286_v62, %v617_v3  ;;  %v615_v34 = vpop.permute.xlu0 %614  ;;  %v4093_v3 = vld [vmem:[#allocation42_spill] sm:$0xff] }
 0x103   : > { %v3071_v46 = vsel %vm1289_vm3, %v1285_v25, %v615_v34  ;;  %1160 = vrot.lane.b32.xlu1 %v2559_v14, %s2142_s10  ;;  %v4094_v25 = vld [vmem:[#allocation29_spill] sm:$0xff] }
 0x104   : > { %1093 = vrot.lane.b32.xlu0 %v4088_v61, %s2141_s29 }
 0x105   : > { %v621_v19 = vpop.permute.xlu1 %620 }
 0x106   : > { %v3084_v36 = vsel %vm1289_vm3, %v1288_v27, %v621_v19  ;;  %v619_v10 = vpop.permute.xlu0 %618 }
 0x107   : > { %v3087_v17 = vsel %vm1289_vm3, %v1287_v29, %v619_v10  ;;  %796 = vrot.lane.b32.xlu1 %v4088_v61, %s2138_s22  ;;  %v4097_v10 = vld [vmem:[#allocation18_spill] sm:$0xff] }
 0x108   : > { %1192 = vrot.lane.b32.xlu0 %v4092_v15, %s2142_s10 }
 0x109   : > { %v3093_v49 = vpop.permute.xlu1 %658 }
 0x10a   : > { %v3095_v31 = vpop.permute.xlu0 %656 }
 0x10b   : > { %895 = vrot.lane.b32.xlu1 %v4092_v15, %s2139_s23 }
 0x10c   : > { %863 = vrot.lane.b32.xlu0 %v2559_v14, %s2139_s23 }
 0x10d   : > { %v3101_v28 = vpop.permute.xlu1 %662 }
 0x10e   : > { %v3103_v62 = vpop.permute.xlu0 %660 }
 0x10f   : > { %1194 = vrot.lane.b32.xlu1 %v4093_v3, %s2142_s10 }
 0x110   : > { %1162 = vrot.lane.b32.xlu0 %v4094_v25, %s2142_s10 }
 0x111   : > { %v667_v34 = vpop.permute.xlu1 %666 }
 0x112   : > { %v3111_v61 = vsel %vm1322_vm5, %v2877_v43, %v667_v34  ;;  %v665_v16 = vpop.permute.xlu0 %664 }
 0x113   : > { %v3115_v14 = vsel %vm1322_vm5, %v2880_v8, %v665_v16  ;;  %897 = vrot.lane.b32.xlu1 %v4093_v3, %s2139_s23  ;;  %v4102_v3 = vld [vmem:[#allocation31_spill] sm:$0xff] }
 0x114   : > { %865 = vrot.lane.b32.xlu0 %v4094_v25, %s2139_s23 }
 0x115   : > { %v671_v27 = vpop.permute.xlu1 %670 }
 0x116   : > { %v3123_v19 = vsel %vm1322_vm5, %v2893_v58, %v671_v27  ;;  %v669_v11 = vpop.permute.xlu0 %668 }
 0x117   : > { %v3127_v43 = vsel %vm1322_vm5, %v2896_v23, %v669_v11  ;;  %993 = vrot.lane.b32.xlu1 %v2413_v59, %s2140_s24 }
 0x118   : > { %961 = vrot.lane.b32.xlu0 %v2238_v24, %s2140_s24 }
 0x119   : > { %v675_v8 = vpop.permute.xlu1 %674 }
 0x11a   : > { %v3135_v13 = vsel %vm1322_vm5, %v2909_v55, %v675_v8  ;;  %v673_v29 = vpop.permute.xlu0 %672 }
 0x11b   : > { %v3139_v58 = vsel %vm1322_vm5, %v2912_v41, %v673_v29  ;;  %995 = vrot.lane.b32.xlu1 %v2407_v53, %s2140_s24  ;;  %v4105_v29 = vld [vmem:[#allocation44_spill] sm:$0xff] }
 0x11c   : > { %963 = vrot.lane.b32.xlu0 %v2232_v22, %s2140_s24 }
 0x11d   : > { %v679_v59 = vpop.permute.xlu1 %678 }
 0x11e   : > { %v3147_v24 = vsel %vm1322_vm5, %v2925_v6, %v679_v59  ;;  %v677_v23 = vpop.permute.xlu0 %676  ;;  %v4106_v59 = vld [vmem:[#allocation30_spill] sm:$0xff] }
 0x11f   : > { %4095 = vst [vmem:[#allocation2_spill] sm:$0xff] %v3147_v24  ;;  %v3151_v55 = vsel %vm1322_vm5, %v2928_v5, %v677_v23  ;;  %1095 = vrot.lane.b32.xlu1 %v4097_v10, %s2141_s29  ;;  %v4124_v24 = vld [vmem:[#allocation50_spill] sm:$0xff] }
 0x120   : > { %4096 = vst [vmem:[#allocation3_spill] sm:$0xff] %v3151_v55  ;;  %1063 = vrot.lane.b32.xlu0 %v4082_v63, %s2141_s29 }
 0x121   : > { %v683_v53 = vpop.permute.xlu1 %682 }
 0x122   : > { %v3159_v22 = vsel %vm1322_vm5, %v2941_v47, %v683_v53  ;;  %v681_v41 = vpop.permute.xlu0 %680 }
 0x123   : > { %4098 = vst [vmem:[#allocation4_spill] sm:$0xff] %v3159_v22  ;;  %v3163_v6 = vsel %vm1322_vm5, %v2944_v42, %v681_v41  ;;  %1065 = vrot.lane.b32.xlu1 %v2266_v33, %s2141_s29  ;;  %v4103_v42 = vld [vmem:[#allocation17_spill] sm:$0xff]  ;;  %v4122_v22 = vld [vmem:[#allocation64_spill] sm:$0xff] }
 0x124   : > { %4099 = vst [vmem:[#allocation13_spill] sm:$0xff] %v3163_v6  ;;  %798 = vrot.lane.b32.xlu0 %v4097_v10, %s2138_s22 }
 0x125   : > { %v687_v5 = vpop.permute.xlu1 %686 }
 0x126   : > { %v3171_v63 = vsel %vm1322_vm5, %v2957_v1, %v687_v5  ;;  %v685_v15 = vpop.permute.xlu0 %684  ;;  %v4104_v1 = vld [vmem:[#allocation45_spill] sm:$0xff] }
 0x127   : > { %4100 = vst [vmem:[#allocation14_spill] sm:$0xff] %v3171_v63  ;;  %v3175_v47 = vsel %vm1322_vm5, %v2960_v30, %v685_v15  ;;  %1164 = vrot.lane.b32.xlu1 %v4102_v3, %s2142_s10 }
 0x128   : > { %4101 = vst [vmem:[#allocation16_spill] sm:$0xff] %v3175_v47  ;;  %1097 = vrot.lane.b32.xlu0 %v4103_v42, %s2141_s29 }
 0x129   : > { %v3181_v33 = vpop.permute.xlu1 %690 }
 0x12a   : > { %v3183_v25 = vpop.permute.xlu0 %688 }
 0x12b   : > { %800 = vrot.lane.b32.xlu1 %v4103_v42, %s2138_s22 }
 0x12c   : > { %1196 = vrot.lane.b32.xlu0 %v4104_v1, %s2142_s10 }
 0x12d   : > { %v3189_v34 = vpop.permute.xlu1 %694 }
 0x12e   : > { %v3191_v30 = vpop.permute.xlu0 %692 }
 0x12f   : > { %899 = vrot.lane.b32.xlu1 %v4104_v1, %s2139_s23  ;;  %v4110_v1 = vld [vmem:[#allocation20_spill] sm:$0xff] }
 0x130   : > { %867 = vrot.lane.b32.xlu0 %v4102_v3, %s2139_s23 }
 0x131   : > { %v699_v16 = vpop.permute.xlu1 %698 }
 0x132   : > { %v3199_v27 = vsel %vm1322_vm5, %v2989_v51, %v699_v16  ;;  %v697_v11 = vpop.permute.xlu0 %696 }
 0x133   : > { %v3203_v8 = vsel %vm1322_vm5, %v2992_v0, %v697_v11  ;;  %1198 = vrot.lane.b32.xlu1 %v4105_v29, %s2142_s10 }
 0x134   : > { %1166 = vrot.lane.b32.xlu0 %v4106_v59, %s2142_s10 }
 0x135   : > { %v703_v23 = vpop.permute.xlu1 %702 }
 0x136   : > { %v3211_v10 = vsel %vm1322_vm5, %v3005_v48, %v703_v23  ;;  %v701_v53 = vpop.permute.xlu0 %700 }
 0x137   : > { %v3215_v51 = vsel %vm1322_vm5, %v3008_v44, %v701_v53  ;;  %901 = vrot.lane.b32.xlu1 %v4105_v29, %s2139_s23 }
 0x138   : > { %869 = vrot.lane.b32.xlu0 %v4106_v59, %s2139_s23 }
 0x139   : > { %v707_v0 = vpop.permute.xlu1 %706 }
 0x13a   : > { %v3223_v41 = vsel %vm1322_vm5, %v3027_v50, %v707_v0  ;;  %v705_v5 = vpop.permute.xlu0 %704 }
 0x13b   : > { %v3227_v48 = vsel %vm1322_vm5, %v3030_v2, %v705_v5  ;;  %997 = vrot.lane.b32.xlu1 %v2435_v20, %s2140_s24  ;;  %v2108_v2 = vld [vmem:[%s2182_s18 + $0x68] sm:$0xff]  ;;  %v4116_v5 = vld [vmem:[#allocation46_spill] sm:$0xff] }
 0x13c   : > { %965 = vrot.lane.b32.xlu0 %v2259_v32, %s2140_s24 }
 0x13d   : > { %v711_v44 = vpop.permute.xlu1 %710 }
 0x13e   : > { %v3235_v15 = vsel %vm1322_vm5, %v3049_v37, %v711_v44  ;;  %v709_v3 = vpop.permute.xlu0 %708  ;;  %v4117_v44 = vld [vmem:[#allocation32_spill] sm:$0xff] }
 0x13f   : > { %4107 = vst [vmem:[#allocation15_spill] sm:$0xff] %v3235_v15  ;;  %v3239_v50 = vsel %vm1322_vm5, %v3052_v40, %v709_v3  ;;  %999 = vrot.lane.b32.xlu1 %v2429_v26, %s2140_s24 }
 0x140   : > { %967 = vrot.lane.b32.xlu0 %v2108_v2, %s2140_s24 }
 0x141   : > { %v715_v20 = vpop.permute.xlu1 %714 }
 0x142   : > { %v3247_v32 = vsel %vm1322_vm5, %v3068_v57, %v715_v20  ;;  %v713_v42 = vpop.permute.xlu0 %712 }
 0x143   : > { %4108 = vst [vmem:[#allocation23_spill] sm:$0xff] %v3247_v32  ;;  %v3251_v37 = vsel %vm1322_vm5, %v3071_v46, %v713_v42  ;;  %1099 = vrot.lane.b32.xlu1 %v4110_v1, %s2141_s29 }
 0x144   : > { %4109 = vst [vmem:[#allocation62_spill] sm:$0xff] %v3251_v37  ;;  %1067 = vrot.lane.b32.xlu0 %v4084_v12, %s2141_s29  ;;  %v4113_v12 = vld [vmem:[#allocation33_spill] sm:$0xff] }
 0x145   : > { %v719_v26 = vpop.permute.xlu1 %718 }
 0x146   : > { %v3259_v40 = vsel %vm1322_vm5, %v3084_v36, %v719_v26  ;;  %v717_v16 = vpop.permute.xlu0 %716  ;;  %v4114_v36 = vld [vmem:[#allocation19_spill] sm:$0xff] }
 0x147   : > { %4111 = vst [vmem:[#allocation24_spill] sm:$0xff] %v3259_v40  ;;  %v3263_v57 = vsel %vm1322_vm5, %v3087_v17, %v717_v16  ;;  %1069 = vrot.lane.b32.xlu1 %v4083_v21, %s2141_s29  ;;  %v4115_v21 = vld [vmem:[#allocation47_spill] sm:$0xff] }
 0x148   : > { %4112 = vst [vmem:[#allocation43_spill] sm:$0xff] %v3263_v57  ;;  %802 = vrot.lane.b32.xlu0 %v4110_v1, %s2138_s22  ;;  %v2109_v1 = vld [vmem:[%s2182_s18 + $0x78] sm:$0xff]  ;;  %v4120_v40 = vld [vmem:[#allocation51_spill] sm:$0xff] }
 0x149   : > { %v3269_v46 = vpop.permute.xlu1 %760  ;;  %v4121_v57 = vld [vmem:[#allocation21_spill] sm:$0xff] }
 0x14a   : > { %v759_v11 = vpop.permute.xlu0 %758 }
 0x14b   : > { %1168 = vrot.lane.b32.xlu1 %v4113_v12, %s2142_s10 }
 0x14c   : > { %1101 = vrot.lane.b32.xlu0 %v4114_v36, %s2141_s29 }
 0x14d   : > { %v3275_v29 = vpop.permute.xlu1 %764 }
 0x14e   : > { %v3277_v59 = vpop.permute.xlu0 %762 }
 0x14f   : > { %804 = vrot.lane.b32.xlu1 %v4114_v36, %s2138_s22 }
 0x150   : > { %1200 = vrot.lane.b32.xlu0 %v4115_v21, %s2142_s10 }
 0x151   : > { %v3283_v17 = vpop.permute.xlu1 %768 }
 0x152   : > { %v3285_v23 = vpop.permute.xlu0 %766 }
 0x153   : > { %903 = vrot.lane.b32.xlu1 %v4115_v21, %s2139_s23 }
 0x154   : > { %871 = vrot.lane.b32.xlu0 %v4113_v12, %s2139_s23  ;;  %v2110_v12 = vld [vmem:[%s2182_s18 + $0x80] sm:$0xff] }
 0x155   : > { %v3291_v53 = vpop.permute.xlu1 %772 }
 0x156   : > { %v3293_v0 = vpop.permute.xlu0 %770 }
 0x157   : > { %1202 = vrot.lane.b32.xlu1 %v4116_v5, %s2142_s10 }
 0x158   : > { %1170 = vrot.lane.b32.xlu0 %v4117_v44, %s2142_s10 }
 0x159   : > { %v3299_v3 = vpop.permute.xlu1 %792 }
 0x15a   : > { %v791_v2 = vpop.permute.xlu0 %790 }
 0x15b   : > { %905 = vrot.lane.b32.xlu1 %v4116_v5, %s2139_s23  ;;  %v4118_v5 = vld [vmem:[#allocation22_spill] sm:$0xff] }
 0x15c   : > { %873 = vrot.lane.b32.xlu0 %v4117_v44, %s2139_s23 }
 0x15d   : > { %v892_v20 = vpop.permute.xlu1 %891 }
 0x15e   : > { %v860_v42 = vpop.permute.xlu0 %859 }
 0x15f   : > { %1001 = vrot.lane.b32.xlu1 %v2457_v60, %s2140_s24  ;;  %v4119_v60 = vld [vmem:[#allocation6_spill] sm:$0xff] }
 0x160   : > { %969 = vrot.lane.b32.xlu0 %v2109_v1, %s2140_s24 }
 0x161   : > { %v3309_v26 = vpop.permute.xlu1 %893 }
 0x162   : > { %v3311_v16 = vpop.permute.xlu0 %861 }
 0x163   : > { %1003 = vrot.lane.b32.xlu1 %v2451_v9, %s2140_s24 }
 0x164   : > { %971 = vrot.lane.b32.xlu0 %v2110_v12, %s2140_s24  ;;  %v2111_v12 = vld [vmem:[%s2182_s18] sm:$0xff] }
 0x165   : > { %v990_v36 = vpop.permute.xlu1 %989  ;;  %v1257_v47 = vsel %vm1256_vm2, %v2111_v12, %v4120_v40 }
 0x166   : > { %v958_v21 = vpop.permute.xlu0 %957  ;;  %v1290_v32 = vsel %vm1289_vm3, %v1257_v47, %v4122_v22  ;;  %v3345_v22 = vld [vmem:[%s2182_s18 + $0xc0] sm:$0xff]  ;;  %v4125_v47 = vld [vmem:[#allocation59_spill] sm:$0xff] }
 0x167   : > { %1103 = vrot.lane.b32.xlu1 %v4118_v5, %s2141_s29  ;;  %v1273_v15 = vsel %vm1256_vm2, %v3345_v22, %v4125_v47 }
 0x168   : > { %1071 = vrot.lane.b32.xlu0 %v4119_v60, %s2141_s29 }
 0x169   : > { %v992_v44 = vpop.permute.xlu1 %991 }
 0x16a   : > { %v3321_v1 = vpop.permute.xlu0 %959 }
 0x16b   : > { %806 = vrot.lane.b32.xlu1 %v4118_v5, %s2138_s22  ;;  %v4123_v5 = vld [vmem:[#allocation5_spill] sm:$0xff] }
 0x16c   : > { %774 = vrot.lane.b32.xlu0 %v4119_v60, %s2138_s22  ;;  %v1323_v60 = vsel %vm1322_vm5, %v1290_v32, %v3095_v31  ;;  %v4126_v32 = vld [vmem:[#allocation35_spill] sm:$0xff] }
 0x16d   : > { %v1092_v9 = vpop.permute.xlu1 %1091  ;;  %v1356_v37 = vsel %vm1355_vm6, %v1323_v60, %v759_v11 }
 0x16e   : > { %v1060_v63 = vpop.permute.xlu0 %1059  ;;  %v1389_v12 = vsel %vm1388_vm7, %v1356_v37, %v860_v42  ;;  %v1306_v37 = vsel %vm1289_vm3, %v1273_v15, %v2968_v54 }
 0x16f   : > { %1105 = vrot.lane.b32.xlu1 %v4121_v57, %s2141_s29  ;;  %v1422_v31 = vsel %vm1421_vm8, %v1389_v12, %v958_v21  ;;  %v1339_v60 = vsel %vm1322_vm5, %v1306_v37, %v3183_v25  ;;  %v2114_v37 = vld [vmem:[%s2182_s18 + $0x8] sm:$0xff] }
 0x170   : > { %1073 = vrot.lane.b32.xlu0 %v4123_v5, %s2141_s29  ;;  %v1455_v11 = vsel %vm1454_vm9, %v1422_v31, %v1060_v63  ;;  %v1372_v21 = vsel %vm1355_vm6, %v1339_v60, %v791_v2  ;;  %v3371_v31 = vld [vmem:[%s2182_s18 + $0xc8] sm:$0xff]  ;;  %v4127_v2 = vld [vmem:[#allocation58_spill] sm:$0xff] }
 0x171   : > { %v1062_v6 = vpop.permute.xlu1 %1061  ;;  %v1405_v12 = vsel %vm1388_vm7, %v1372_v21, %v892_v20 }
 0x172   : > { %v3339_v40 = vpop.permute.xlu0 %794  ;;  %v1438_v54 = vsel %vm1421_vm8, %v1405_v12, %v990_v36 }
 0x173   : > { %1204 = vrot.lane.b32.xlu1 %v4124_v24, %s2142_s10  ;;  %v1471_v25 = vsel %vm1454_vm9, %v1438_v54, %v1092_v9  ;;  %v4129_v9 = vld [vmem:[#allocation63_spill] sm:$0xff]  ;;  %v4130_v54 = vld [vmem:[#allocation48_spill] sm:$0xff] }
 0x174   : > { %1172 = vrot.lane.b32.xlu0 %v4126_v32, %s2142_s10 }
 0x175   : > { %v1161_v42 = vpop.permute.xlu1 %1160 }
 0x176   : > { %v1094_v55 = vpop.permute.xlu0 %1093  ;;  %v1488_v47 = vsel %vm1487_vm10, %v1455_v11, %v1161_v42 }
 0x177   : > { %808 = vrot.lane.b32.xlu1 %v4121_v57, %s2138_s22  ;;  %2029 = vmatprep.mubr.msk.f32.mxu0 %vm1525_vm11, %v1488_v47  ;;  %v1274_v57 = vsel %vm1256_vm2, %v3371_v31, %v4127_v2 }
 0x178   : > { %776 = vrot.lane.b32.xlu0 %v4123_v5, %s2138_s22  ;;  %v4128_v5 = vld [vmem:[#allocation55_spill] sm:$0xff]  ;;  %v1307_v11 = vsel %vm1289_vm3, %v1274_v57, %v2966_v52 }
 0x179   : > { %v3367_v63 = vpop.permute.xlu1 %796  ;;  %v1258_v36 = vsel %vm1256_vm2, %v2114_v37, %v4128_v5  ;;  %v2117_v5 = vld [vmem:[%s2182_s18 + $0x158] sm:$0xff] }
 0x17a   : > { %v1193_v15 = vpop.permute.xlu0 %1192  ;;  %v1291_v42 = vsel %vm1289_vm3, %v1258_v36, %v4129_v9  ;;  %v2118_v36 = vld [vmem:[%s2182_s18 + $0x98] sm:$0xff] }
 0x17b   : > { %907 = vrot.lane.b32.xlu1 %v4124_v24, %s2139_s23  ;;  %v1504_v20 = vsel %vm1487_vm10, %v1471_v25, %v1193_v15  ;;  %v1340_v24 = vsel %vm1322_vm5, %v1307_v11, %v3181_v33  ;;  %v1324_v47 = vsel %vm1322_vm5, %v1291_v42, %v3093_v49  ;;  %v4131_v49 = vld [vmem:[#allocation34_spill] sm:$0xff] }
 0x17c   : > { %875 = vrot.lane.b32.xlu0 %v4126_v32, %s2139_s23  ;;  %2053 = vmatprep.mubr.msk.f32.mxu1 %vm1525_vm11, %v1504_v20  ;;  %v1373_v21 = vsel %vm1355_vm6, %v1340_v24, %v3299_v3  ;;  %v1357_v32 = vsel %vm1355_vm6, %v1324_v47, %v3269_v46  ;;  %v4132_v42 = vld [vmem:[#allocation26_spill] sm:$0xff]  ;;  %v4133_v24 = vld [vmem:[#allocation8_spill] sm:$0xff] }
 0x17d   : > { %v3391_v60 = vpop.permute.xlu1 %895  ;;  %v1406_v12 = vsel %vm1388_vm7, %v1373_v21, %v3309_v26  ;;  %v1390_v33 = vsel %vm1388_vm7, %v1357_v32, %v3311_v16  ;;  %v2119_v32 = vld [vmem:[%s2182_s18 + $0x18] sm:$0xff] }
 0x17e   : > { %v864_v52 = vpop.permute.xlu0 %863  ;;  %v1439_v25 = vsel %vm1421_vm8, %v1406_v12, %v992_v44  ;;  %v1423_v3 = vsel %vm1421_vm8, %v1390_v33, %v3321_v1  ;;  %v2115_v44 = vld [vmem:[%s2182_s18 + $0x150] sm:$0xff]  ;;  %v4134_v12 = vld [vmem:[#allocation49_spill] sm:$0xff]  ;;  %v4135_v33 = vld [vmem:[#allocation66_spill] sm:$0xff] }
 0x17f   : > { %1206 = vrot.lane.b32.xlu1 %v4130_v54, %s2142_s10  ;;  %v1472_v46 = vsel %vm1454_vm9, %v1439_v25, %v1094_v55  ;;  %v1456_v26 = vsel %vm1454_vm9, %v1423_v3, %v1062_v6  ;;  %v2116_v1 = vld [vmem:[%s2182_s18 + $0x90] sm:$0xff] }
 0x180   : > { %1174 = vrot.lane.b32.xlu0 %v4131_v49, %s2142_s10 }
 0x181   : > { %v1195_v15 = vpop.permute.xlu1 %1194 }
 0x182   : > { %v1505_v2 = vsel %vm1487_vm10, %v1472_v46, %v1195_v15  ;;  %v1163_v57 = vpop.permute.xlu0 %1162 }
 0x183   : > { %v1489_v16 = vsel %vm1487_vm10, %v1456_v26, %v1163_v57  ;;  %909 = vrot.lane.b32.xlu1 %v4130_v54, %s2139_s23  ;;  %2054 = vmatmul.mubr.msk.f32.vlgmr.msra.gmra.mrb[0].mxu1 %vm1525_vm11, %v1505_v2  ;;  %v1259_v54 = vsel %vm1256_vm2, %v2119_v32, %v4134_v12  ;;  %v4136_v2 = vld [vmem:[#allocation25_spill] sm:$0xff]  ;;  %v4139_v32 = vld [vmem:[#allocation54_spill] sm:$0xff] }
 0x184   : > { %877 = vrot.lane.b32.xlu0 %v4131_v49, %s2139_s23  ;;  %2030 = vmatmul.mubr.msk.f32.vlgmr.msra.gmra.mrb[0].mxu0 %vm1525_vm11, %v1489_v16  ;;  %v1292_v25 = vsel %vm1289_vm3, %v1259_v54, %v4135_v33  ;;  %v3455_v57 = vld [vmem:[%s2182_s18 + $0xd8] sm:$0xff] }
 0x185   : > { %v3420_v55 = vpop.permute.xlu1 %897  ;;  %v1325_v49 = vsel %vm1322_vm5, %v1292_v25, %v3103_v62  ;;  %v4137_v16 = vld [vmem:[#allocation61_spill] sm:$0xff]  ;;  %v4138_v62 = vld [vmem:[#allocation7_spill] sm:$0xff]  ;;  %v3483_v25 = vld [vmem:[%s2182_s18 + $0xe0] sm:$0xff] }
 0x186   : > { %v3422_v6 = vpop.permute.xlu0 %865  ;;  %v1358_v46 = vsel %vm1355_vm6, %v1325_v49, %v3277_v59 }
 0x187   : > { %1005 = vrot.lane.b32.xlu1 %v2115_v44, %s2140_s24  ;;  %v1391_v26 = vsel %vm1388_vm7, %v1358_v46, %v864_v52  ;;  %v1275_v44 = vsel %vm1256_vm2, %v3455_v57, %v4137_v16 }
 0x188   : > { %973 = vrot.lane.b32.xlu0 %v2116_v1, %s2140_s24  ;;  %v1308_v59 = vsel %vm1289_vm3, %v1275_v44, %v2976_v39 }
 0x189   : > { %v994_v20 = vpop.permute.xlu1 %993 }
 0x18a   : > { %v962_v37 = vpop.permute.xlu0 %961 }
 0x18b   : > { %1007 = vrot.lane.b32.xlu1 %v2117_v5, %s2140_s24  ;;  %v1424_v1 = vsel %vm1421_vm8, %v1391_v26, %v962_v37  ;;  %v4142_v26 = vld [vmem:[#allocation53_spill] sm:$0xff] }
 0x18c   : > { %975 = vrot.lane.b32.xlu0 %v2118_v36, %s2140_s24  ;;  %v1341_v36 = vsel %vm1322_vm5, %v1308_v59, %v3191_v30 }
 0x18d   : > { %v996_v11 = vpop.permute.xlu1 %995  ;;  %v1374_v37 = vsel %vm1355_vm6, %v1341_v36, %v3339_v40  ;;  %v4141_v40 = vld [vmem:[#allocation60_spill] sm:$0xff] }
 0x18e   : > { %v964_v9 = vpop.permute.xlu0 %963  ;;  %v1407_v39 = vsel %vm1388_vm7, %v1374_v37, %v3391_v60  ;;  %v1276_v49 = vsel %vm1256_vm2, %v3483_v25, %v4141_v40  ;;  %v2122_v60 = vld [vmem:[%s2182_s18 + $0x20] sm:$0xff]  ;;  %v2125_v40 = vld [vmem:[%s2182_s18 + $0x170] sm:$0xff] }
 0x18f   : > { %1107 = vrot.lane.b32.xlu1 %v4132_v42, %s2141_s29  ;;  %v1440_v30 = vsel %vm1421_vm8, %v1407_v39, %v994_v20  ;;  %v1260_v20 = vsel %vm1256_vm2, %v2122_v60, %v4142_v26  ;;  %v1309_v16 = vsel %vm1289_vm3, %v1276_v49, %v2974_v56  ;;  %v2126_v49 = vld [vmem:[%s2182_s18 + $0xb0] sm:$0xff] }
 0x190   : > { %1075 = vrot.lane.b32.xlu0 %v4133_v24, %s2141_s29  ;;  %v4146_v26 = vld [vmem:[#allocation28_spill] sm:$0xff] }
 0x191   : > { %v1096_v47 = vpop.permute.xlu1 %1095 }
 0x192   : > { %v1064_v21 = vpop.permute.xlu0 %1063  ;;  %v1473_v54 = vsel %vm1454_vm9, %v1440_v30, %v1096_v47  ;;  %v4143_v47 = vld [vmem:[#allocation65_spill] sm:$0xff]  ;;  %v2124_v30 = vld [vmem:[%s2182_s18 + $0xa8] sm:$0xff] }
 0x193   : > { %810 = vrot.lane.b32.xlu1 %v4132_v42, %s2138_s22  ;;  %v1457_v52 = vsel %vm1454_vm9, %v1424_v1, %v1064_v21  ;;  %v4140_v21 = vld [vmem:[#allocation37_spill] sm:$0xff]  ;;  %v1293_v44 = vsel %vm1289_vm3, %v1260_v20, %v4143_v47  ;;  %v1342_v1 = vsel %vm1322_vm5, %v1309_v16, %v3189_v34  ;;  %v4147_v20 = vld [vmem:[#allocation10_spill] sm:$0xff]  ;;  %v1360_v47 = vsel %vm1355_vm6, %v3115_v14, %v3285_v23  ;;  %v4148_v23 = vld [vmem:[#allocation27_spill] sm:$0xff] }
 0x194   : > { %778 = vrot.lane.b32.xlu0 %v4133_v24, %s2138_s22 }
 0x195   : > { %v1066_v3 = vpop.permute.xlu1 %1065 }
 0x196   : > { %v3449_v15 = vpop.permute.xlu0 %798 }
 0x197   : > { %1109 = vrot.lane.b32.xlu1 %v4136_v2, %s2141_s29  ;;  %v1376_v14 = vsel %vm1355_vm6, %v3203_v8, %v3449_v15  ;;  %v4150_v8 = vld [vmem:[#allocation57_spill] sm:$0xff]  ;;  %v4151_v15 = vld [vmem:[#allocation39_spill] sm:$0xff] }
 0x198   : > { %1077 = vrot.lane.b32.xlu0 %v4138_v62, %s2141_s29 }
 0x199   : > { %v1165_v5 = vpop.permute.xlu1 %1164 }
 0x19a   : > { %v1490_v42 = vsel %vm1487_vm10, %v1457_v52, %v1165_v5  ;;  %v1098_v24 = vpop.permute.xlu0 %1097  ;;  %v1375_v52 = vsel %vm1355_vm6, %v1342_v1, %v3367_v63 }
 0x19b   : > { %1208 = vrot.lane.b32.xlu1 %v4139_v32, %s2142_s10  ;;  %2032 = vmatprep.mubr.msk.f32.mxu0 %vm1525_vm11, %v1490_v42 }
 0x19c   : > { %1176 = vrot.lane.b32.xlu0 %v4140_v21, %s2142_s10 }
 0x19d   : > { %v3479_v12 = vpop.permute.xlu1 %800 }
 0x19e   : > { %v1197_v33 = vpop.permute.xlu0 %1196 }
 0x19f   : > { %v1506_v46 = vsel %vm1487_vm10, %v1473_v54, %v1197_v33  ;;  %812 = vrot.lane.b32.xlu1 %v4136_v2, %s2138_s22  ;;  %v1326_v2 = vsel %vm1322_vm5, %v1293_v44, %v3101_v28 }
 0x1a0   : > { %780 = vrot.lane.b32.xlu0 %v4138_v62, %s2138_s22  ;;  %2056 = vmatprep.mubr.msk.f32.mxu1 %vm1525_vm11, %v1506_v46  ;;  %v1359_v56 = vsel %vm1355_vm6, %v1326_v2, %v3275_v29  ;;  %v1408_v62 = vsel %vm1388_vm7, %v1375_v52, %v3420_v55 }
 0x1a1   : > { %v900_v59 = vpop.permute.xlu1 %899  ;;  %v1392_v34 = vsel %vm1388_vm7, %v1359_v56, %v3422_v6  ;;  %v1441_v36 = vsel %vm1421_vm8, %v1408_v62, %v996_v11  ;;  %v4144_v6 = vld [vmem:[#allocation52_spill] sm:$0xff] }
 0x1a2   : > { %v868_v5 = vpop.permute.xlu0 %867  ;;  %v1425_v28 = vsel %vm1421_vm8, %v1392_v34, %v964_v9  ;;  %v1474_v63 = vsel %vm1454_vm9, %v1441_v36, %v1098_v24  ;;  %v4145_v11 = vld [vmem:[#allocation36_spill] sm:$0xff]  ;;  %v4149_v36 = vld [vmem:[#allocation9_spill] sm:$0xff] }
 0x1a3   : > { %911 = vrot.lane.b32.xlu1 %v4139_v32, %s2139_s23  ;;  %v1458_v42 = vsel %vm1454_vm9, %v1425_v28, %v1066_v3  ;;  %v1393_v1 = vsel %vm1388_vm7, %v1360_v47, %v868_v5  ;;  %v1409_v5 = vsel %vm1388_vm7, %v1376_v14, %v900_v59 }
 0x1a4   : > { %879 = vrot.lane.b32.xlu0 %v4140_v21, %s2139_s23  ;;  %v2123_v21 = vld [vmem:[%s2182_s18 + $0x168] sm:$0xff] }
 0x1a5   : > { %v1199_v29 = vpop.permute.xlu1 %1198 }
 0x1a6   : > { %v1507_v55 = vsel %vm1487_vm10, %v1474_v63, %v1199_v29  ;;  %v1167_v37 = vpop.permute.xlu0 %1166 }
 0x1a7   : > { %v1491_v32 = vsel %vm1487_vm10, %v1458_v42, %v1167_v37  ;;  %1210 = vrot.lane.b32.xlu1 %v4144_v6, %s2142_s10  ;;  %2057 = vmatmul.mubr.msk.f32.gmra.mrb[2].mxu1 %vm1525_vm11, %v1507_v55  ;;  %v1377_v37 = vsel %vm1355_vm6, %v3199_v27, %v3479_v12 }
 0x1a8   : > { %1178 = vrot.lane.b32.xlu0 %v4145_v11, %s2142_s10  ;;  %2033 = vmatmul.mubr.msk.f32.gmra.mrb[2].mxu0 %vm1525_vm11, %v1491_v32 }
 0x1a9   : > { %v902_v9 = vpop.permute.xlu1 %901 }
 0x1aa   : > { %v870_v3 = vpop.permute.xlu0 %869 }
 0x1ab   : > { %913 = vrot.lane.b32.xlu1 %v4144_v6, %s2139_s23  ;;  %v1361_v6 = vsel %vm1355_vm6, %v3111_v61, %v3283_v17 }
 0x1ac   : > { %881 = vrot.lane.b32.xlu0 %v4145_v11, %s2139_s23  ;;  %v1410_v11 = vsel %vm1388_vm7, %v1377_v37, %v902_v9 }
 0x1ad   : > { %v998_v24 = vpop.permute.xlu1 %997 }
 0x1ae   : > { %v966_v39 = vpop.permute.xlu0 %965  ;;  %v1442_v28 = vsel %vm1421_vm8, %v1409_v5, %v998_v24  ;;  %v1394_v24 = vsel %vm1388_vm7, %v1361_v6, %v870_v3 }
 0x1af   : > { %1009 = vrot.lane.b32.xlu1 %v2123_v21, %s2140_s24  ;;  %v1426_v2 = vsel %vm1421_vm8, %v1393_v1, %v966_v39 }
 0x1b0   : > { %977 = vrot.lane.b32.xlu0 %v2124_v30, %s2140_s24 }
 0x1b1   : > { %v1000_v54 = vpop.permute.xlu1 %999 }
 0x1b2   : > { %v968_v33 = vpop.permute.xlu0 %967  ;;  %v1443_v39 = vsel %vm1421_vm8, %v1410_v11, %v1000_v54  ;;  %v4156_v11 = vld [vmem:[#allocation41_spill] sm:$0xff] }
 0x1b3   : > { %1011 = vrot.lane.b32.xlu1 %v2125_v40, %s2140_s24  ;;  %v1427_v21 = vsel %vm1421_vm8, %v1394_v24, %v968_v33  ;;  %v4152_v33 = vld [vmem:[#allocation56_spill] sm:$0xff]  ;;  %v4153_v40 = vld [vmem:[#allocation38_spill] sm:$0xff] }
 0x1b4   : > { %979 = vrot.lane.b32.xlu0 %v2126_v49, %s2140_s24 }
 0x1b5   : > { %v1100_v46 = vpop.permute.xlu1 %1099 }
 0x1b6   : > { %v1068_v60 = vpop.permute.xlu0 %1067  ;;  %v1475_v29 = vsel %vm1454_vm9, %v1442_v28, %v1100_v46 }
 0x1b7   : > { %1111 = vrot.lane.b32.xlu1 %v4146_v26, %s2141_s29  ;;  %v1459_v52 = vsel %vm1454_vm9, %v1426_v2, %v1068_v60 }
 0x1b8   : > { %1079 = vrot.lane.b32.xlu0 %v4147_v20, %s2141_s29 }
 0x1b9   : > { %v1070_v16 = vpop.permute.xlu1 %1069 }
 0x1ba   : > { %v3548_v44 = vpop.permute.xlu0 %802  ;;  %v1460_v30 = vsel %vm1454_vm9, %v1427_v21, %v1070_v16  ;;  %v753_v16 = vrot.slane %v2871_v35, 1 }
 0x1bb   : > { %814 = vrot.lane.b32.xlu1 %v4146_v26, %s2138_s22 }
 0x1bc   : > { %782 = vrot.lane.b32.xlu0 %v4147_v20, %s2138_s22  ;;  %v754_v20 = vrot.slane %v2865_v4, 1 }
 0x1bd   : > { %v1169_v56 = vpop.permute.xlu1 %1168 }
 0x1be   : > { %v1492_v62 = vsel %vm1487_vm10, %v1459_v52, %v1169_v56  ;;  %v1102_v34 = vpop.permute.xlu0 %1101  ;;  %v755_v2 = vsel %vm300_vm0, %v753_v16, %v754_v20  ;;  %v248_v56 = vld [vmem:[%s2182_s18 + $0x190] sm:$0x3] }
 0x1bf   : > { %1113 = vrot.lane.b32.xlu1 %v4148_v23, %s2141_s29  ;;  %2035 = vmatprep.mubr.msk.f32.mxu0 %vm1525_vm11, %v1492_v62  ;;  %v1476_v27 = vsel %vm1454_vm9, %v1443_v39, %v1102_v34  ;;  %v4154_v34 = vld [vmem:[#allocation12_spill] sm:$0xff] }
 0x1c0   : > { %1081 = vrot.lane.b32.xlu0 %v4149_v36, %s2141_s29 }
 0x1c1   : > { %v3568_v63 = vpop.permute.xlu1 %804 }
 0x1c2   : > { %v1201_v42 = vpop.permute.xlu0 %1200  ;;  %v1379_v39 = vsel %vm1355_vm6, %v3211_v10, %v3568_v63 }
 0x1c3   : > { %v1508_v55 = vsel %vm1487_vm10, %v1475_v29, %v1201_v42  ;;  %1212 = vrot.lane.b32.xlu1 %v4150_v8, %s2142_s10  ;;  %v854_v29 = vrot.slane %v2871_v35, 2 }
 0x1c4   : > { %1180 = vrot.lane.b32.xlu0 %v4151_v15, %s2142_s10  ;;  %2059 = vmatprep.mubr.msk.f32.mxu1 %vm1525_vm11, %v1508_v55 }
 0x1c5   : > { %v904_v59 = vpop.permute.xlu1 %903 }
 0x1c6   : > { %v872_v32 = vpop.permute.xlu0 %871 }
 0x1c7   : > { %816 = vrot.lane.b32.xlu1 %v4148_v23, %s2138_s22  ;;  %v1378_v23 = vsel %vm1355_vm6, %v3215_v51, %v3548_v44 }
 0x1c8   : > { %784 = vrot.lane.b32.xlu0 %v4149_v36, %s2138_s22  ;;  %v1362_v36 = vsel %vm1355_vm6, %v3127_v43, %v3293_v0  ;;  %v1411_v28 = vsel %vm1388_vm7, %v1378_v23, %v904_v59  ;;  %v4155_v59 = vld [vmem:[#allocation11_spill] sm:$0xff] }
 0x1c9   : > { %v1203_v12 = vpop.permute.xlu1 %1202  ;;  %v1395_v42 = vsel %vm1388_vm7, %v1362_v36, %v872_v32 }
 0x1ca   : > { %v1509_v61 = vsel %vm1487_vm10, %v1476_v27, %v1203_v12  ;;  %v1171_v17 = vpop.permute.xlu0 %1170  ;;  %v1363_v27 = vsel %vm1355_vm6, %v3123_v19, %v3291_v53 }
 0x1cb   : > { %v1493_v9 = vsel %vm1487_vm10, %v1460_v30, %v1171_v17  ;;  %915 = vrot.lane.b32.xlu1 %v4150_v8, %s2139_s23  ;;  %2060 = vmatmul.mubr.msk.f32.gmra.mrb[4].mxu1 %vm1525_vm11, %v1509_v61  ;;  %v857_v17 = vrot.slane %v248_v56, 2 }
 0x1cc   : > { %883 = vrot.lane.b32.xlu0 %v4151_v15, %s2139_s23  ;;  %2036 = vmatmul.mubr.msk.f32.gmra.mrb[4].mxu0 %vm1525_vm11, %v1493_v9 }
 0x1cd   : > { %v906_v3 = vpop.permute.xlu1 %905 }
 0x1ce   : > { %v874_v54 = vpop.permute.xlu0 %873  ;;  %v1412_v12 = vsel %vm1388_vm7, %v1379_v39, %v906_v3 }
 0x1cf   : > { %1214 = vrot.lane.b32.xlu1 %v4152_v33, %s2142_s10  ;;  %v1396_v30 = vsel %vm1388_vm7, %v1363_v27, %v874_v54 }
 0x1d0   : > { %1182 = vrot.lane.b32.xlu0 %v4153_v40, %s2142_s10 }
 0x1d1   : > { %v1002_v49 = vpop.permute.xlu1 %1001 }
 0x1d2   : > { %v970_v46 = vpop.permute.xlu0 %969  ;;  %v1444_v55 = vsel %vm1421_vm8, %v1411_v28, %v1002_v49 }
 0x1d3   : > { %917 = vrot.lane.b32.xlu1 %v4152_v33, %s2139_s23 }
 0x1d4   : > { %885 = vrot.lane.b32.xlu0 %v4153_v40, %s2139_s23 }
 0x1d5   : > { %v1004_v60 = vpop.permute.xlu1 %1003 }
 0x1d6   : > { %v972_v26 = vpop.permute.xlu0 %971  ;;  %v1445_v61 = vsel %vm1421_vm8, %v1412_v12, %v1004_v60 }
 0x1d7   : > { %1013 = vrot.lane.b32.xlu1 %v2871_v35, %s2140_s24  ;;  %v1429_v9 = vsel %vm1421_vm8, %v1396_v30, %v972_v26 }
 0x1d8   : > { %981 = vrot.lane.b32.xlu0 %v3345_v22, %s2140_s24  ;;  %v756_v22 = vrot.slane %v248_v56, 1 }
 0x1d9   : > { %v1104_v47 = vpop.permute.xlu1 %1103 }
 0x1da   : > { %v1072_v1 = vpop.permute.xlu0 %1071  ;;  %v757_v51 = vsel %vm300_vm0, %v754_v20, %v756_v22  ;;  %v1477_v44 = vsel %vm1454_vm9, %v1444_v55, %v1104_v47  ;;  %v249_v20 = vld [vmem:[%s2182_s18 + $0x198] sm:$0xff]  ;;  %v250_v47 = vld [vmem:[%s2182_s18 + $0x1a0] sm:$0xff]  ;;  %v251_v22 = vld [vmem:[%s2182_s18 + $0x1a8] sm:$0x3] }
 0x1db   : > { %1015 = vrot.lane.b32.xlu1 %v2865_v4, %s2140_s24  ;;  %v1055_v56 = vrot.slane %v250_v47, 1  ;;  %v1155_v28 = vrot.slane %v249_v20, 2 }
 0x1dc   : > { %983 = vrot.lane.b32.xlu0 %v3371_v31, %s2140_s24  ;;  %v855_v31 = vrot.slane %v2865_v4, 2  ;;  %v1428_v4 = vsel %vm1421_vm8, %v1395_v42, %v970_v46  ;;  %v4157_v46 = vld [vmem:[#allocation40_spill] sm:$0xff] }
 0x1dd   : > { %v3620_v52 = vpop.permute.xlu1 %806  ;;  %v1461_v0 = vsel %vm1454_vm9, %v1428_v4, %v1072_v1 }
 0x1de   : > { %v3623_v62 = vpop.permute.xlu0 %774  ;;  %v856_v37 = vsel %vm477_vm1, %v854_v29, %v855_v31  ;;  %v858_v54 = vsel %vm477_vm1, %v855_v31, %v857_v17  ;;  %v1156_v29 = vrot.slane %v250_v47, 2 }
 0x1df   : > { %1115 = vrot.lane.b32.xlu1 %v755_v2, %s2141_s29 }
 0x1e0   : > { %1083 = vrot.lane.b32.xlu0 %v4154_v34, %s2141_s29 }
 0x1e1   : > { %v1106_v14 = vpop.permute.xlu1 %1105 }
 0x1e2   : > { %v1074_v5 = vpop.permute.xlu0 %1073  ;;  %v1478_v10 = vsel %vm1454_vm9, %v1445_v61, %v1106_v14 }
 0x1e3   : > { %818 = vrot.lane.b32.xlu1 %v755_v2, %s2138_s22  ;;  %v1462_v33 = vsel %vm1454_vm9, %v1429_v9, %v1074_v5  ;;  %v1054_v2 = vrot.slane %v249_v20, 1  ;;  %v1057_v5 = vrot.slane %v251_v22, 1 }
 0x1e4   : > { %786 = vrot.lane.b32.xlu0 %v4154_v34, %s2138_s22 }
 0x1e5   : > { %v1205_v43 = vpop.permute.xlu1 %1204  ;;  %v1056_v23 = vsel %vm300_vm0, %v1054_v2, %v1055_v56 }
 0x1e6   : > { %v1510_v8 = vsel %vm1487_vm10, %v1477_v44, %v1205_v43  ;;  %v1173_v15 = vpop.permute.xlu0 %1172  ;;  %v1157_v43 = vsel %vm477_vm1, %v1155_v28, %v1156_v29  ;;  %v4159_v28 = vld [vmem:[#allocation15_spill] sm:$0xff] }
 0x1e7   : > { %v1494_v35 = vsel %vm1487_vm10, %v1461_v0, %v1173_v15  ;;  %1117 = vrot.lane.b32.xlu1 %v757_v51, %s2141_s29  ;;  %2062 = vmatprep.mubr.msk.f32.mxu1 %vm1525_vm11, %v1510_v8  ;;  %v1158_v0 = vrot.slane %v251_v22, 2 }
 0x1e8   : > { %1085 = vrot.lane.b32.xlu0 %v4155_v59, %s2141_s29  ;;  %2038 = vmatprep.mubr.msk.f32.mxu0 %vm1525_vm11, %v1494_v35 }
 0x1e9   : > { %v3654_v32 = vpop.permute.xlu1 %808 }
 0x1ea   : > { %v3656_v6 = vpop.permute.xlu0 %776 }
 0x1eb   : > { %1216 = vrot.lane.b32.xlu1 %v856_v37, %s2142_s10 }
 0x1ec   : > { %1184 = vrot.lane.b32.xlu0 %v4156_v11, %s2142_s10 }
 0x1ed   : > { %v908_v24 = vpop.permute.xlu1 %907 }
 0x1ee   : > { %v876_v21 = vpop.permute.xlu0 %875 }
 0x1ef   : > { %820 = vrot.lane.b32.xlu1 %v757_v51, %s2138_s22  ;;  %v1364_v51 = vsel %vm1355_vm6, %v3139_v58, %v3623_v62 }
 0x1f0   : > { %788 = vrot.lane.b32.xlu0 %v4155_v59, %s2138_s22  ;;  %v1397_v44 = vsel %vm1388_vm7, %v1364_v51, %v876_v21 }
 0x1f1   : > { %v1207_v63 = vpop.permute.xlu1 %1206 }
 0x1f2   : > { %v1511_v19 = vsel %vm1487_vm10, %v1478_v10, %v1207_v63  ;;  %v1175_v53 = vpop.permute.xlu0 %1174 }
 0x1f3   : > { %v1495_v3 = vsel %vm1487_vm10, %v1462_v33, %v1175_v53  ;;  %919 = vrot.lane.b32.xlu1 %v856_v37, %s2139_s23  ;;  %2063 = vmatmul.mubr.msk.f32.gmra.mrb[6].mxu1 %vm1525_vm11, %v1511_v19 }
 0x1f4   : > { %887 = vrot.lane.b32.xlu0 %v4156_v11, %s2139_s23  ;;  %2039 = vmatmul.mubr.msk.f32.gmra.mrb[6].mxu0 %vm1525_vm11, %v1495_v3 }
 0x1f5   : > { %v910_v40 = vpop.permute.xlu1 %909 }
 0x1f6   : > { %v878_v49 = vpop.permute.xlu0 %877 }
 0x1f7   : > { %1218 = vrot.lane.b32.xlu1 %v858_v54, %s2142_s10 }
 0x1f8   : > { %1186 = vrot.lane.b32.xlu0 %v4157_v46, %s2142_s10 }
 0x1f9   : > { %v1006_v60 = vpop.permute.xlu1 %1005 }
 0x1fa   : > { %v974_v26 = vpop.permute.xlu0 %973 }
 0x1fb   : > { %921 = vrot.lane.b32.xlu1 %v858_v54, %s2139_s23 }
 0x1fc   : > { %889 = vrot.lane.b32.xlu0 %v4157_v46, %s2139_s23 }
 0x1fd   : > { %v1008_v16 = vpop.permute.xlu1 %1007 }
 0x1fe   : > { %v976_v1 = vpop.permute.xlu0 %975 }
 0x1ff   : > { %1017 = vrot.lane.b32.xlu1 %v249_v20, %s2140_s24 }
 0x200   : > { %985 = vrot.lane.b32.xlu0 %v3455_v57, %s2140_s24  ;;  %v1058_v57 = vsel %vm300_vm0, %v1055_v56, %v1057_v5 }
 0x201   : > { %v1108_v34 = vpop.permute.xlu1 %1107 }
 0x202   : > { %v1076_v14 = vpop.permute.xlu0 %1075 }
 0x203   : > { %1019 = vrot.lane.b32.xlu1 %v250_v47, %s2140_s24 }
 0x204   : > { %987 = vrot.lane.b32.xlu0 %v3483_v25, %s2140_s24  ;;  %v1380_v25 = vsel %vm1355_vm6, %v3227_v48, %v3620_v52  ;;  %v1430_v48 = vsel %vm1421_vm8, %v1397_v44, %v974_v26  ;;  %v4158_v26 = vld [vmem:[#allocation3_spill] sm:$0xff] }
 0x205   : > { %v811_v31 = vpop.permute.xlu1 %810  ;;  %v1413_v4 = vsel %vm1388_vm7, %v1380_v25, %v908_v24  ;;  %v1463_v58 = vsel %vm1454_vm9, %v1430_v48, %v1076_v14  ;;  %v1381_v24 = vsel %vm1355_vm6, %v3223_v41, %v3654_v32 }
 0x206   : > { %v3700_v36 = vpop.permute.xlu0 %778  ;;  %v1414_v21 = vsel %vm1388_vm7, %v1381_v24, %v910_v40  ;;  %v1382_v46 = vsel %vm1355_vm6, %v3239_v50, %v811_v31 }
 0x207   : > { %1119 = vrot.lane.b32.xlu1 %v1056_v23, %s2141_s29  ;;  %v1447_v12 = vsel %vm1421_vm8, %v1414_v21, %v1008_v16  ;;  %v1366_v20 = vsel %vm1355_vm6, %v4158_v26, %v3700_v36 }
 0x208   : > { %1087 = vrot.lane.b32.xlu0 %v4086_v38, %s2141_s29  ;;  %v1446_v38 = vsel %vm1421_vm8, %v1413_v4, %v1006_v60 }
 0x209   : > { %v1110_v42 = vpop.permute.xlu1 %1109  ;;  %v1479_v52 = vsel %vm1454_vm9, %v1446_v38, %v1108_v34 }
 0x20a   : > { %v1078_v55 = vpop.permute.xlu0 %1077 }
 0x20b   : > { %1121 = vrot.lane.b32.xlu1 %v1058_v57, %s2141_s29 }
 0x20c   : > { %1089 = vrot.lane.b32.xlu0 %v4085_v45, %s2141_s29  ;;  %v1159_v45 = vsel %vm477_vm1, %v1156_v29, %v1158_v0 }
 0x20d   : > { %v1209_v8 = vpop.permute.xlu1 %1208 }
 0x20e   : > { %v1512_v62 = vsel %vm1487_vm10, %v1479_v52, %v1209_v8  ;;  %v1177_v15 = vpop.permute.xlu0 %1176 }
 0x20f   : > { %v1496_v35 = vsel %vm1487_vm10, %v1463_v58, %v1177_v15  ;;  %1220 = vrot.lane.b32.xlu1 %v1157_v43, %s2142_s10  ;;  %2065 = vmatprep.mubr.msk.f32.mxu1 %vm1525_vm11, %v1512_v62 }
 0x210   : > { %1188 = vrot.lane.b32.xlu0 %v2650_v18, %s2142_s10  ;;  %2041 = vmatprep.mubr.msk.f32.mxu0 %vm1525_vm11, %v1496_v35  ;;  %v1365_v18 = vsel %vm1355_vm6, %v3135_v13, %v3656_v6 }
 0x211   : > { %v813_v59 = vpop.permute.xlu1 %812  ;;  %v1398_v27 = vsel %vm1388_vm7, %v1365_v18, %v878_v49 }
 0x212   : > { %v781_v37 = vpop.permute.xlu0 %780  ;;  %v1431_v30 = vsel %vm1421_vm8, %v1398_v27, %v976_v1  ;;  %v1383_v29 = vsel %vm1355_vm6, %v4159_v28, %v813_v59 }
 0x213   : > { %1222 = vrot.lane.b32.xlu1 %v1159_v45, %s2142_s10  ;;  %v1464_v17 = vsel %vm1454_vm9, %v1431_v30, %v1078_v55 }
 0x214   : > { %1190 = vrot.lane.b32.xlu0 %v2645_v7, %s2142_s10  ;;  %v1480_v7 = vsel %vm1454_vm9, %v1447_v12, %v1110_v42  ;;  %v4160_v42 = vld [vmem:[#allocation2_spill] sm:$0xff] }
 0x215   : > { %v912_v11 = vpop.permute.xlu1 %911  ;;  %v1367_v25 = vsel %vm1355_vm6, %v4160_v42, %v781_v37 }
 0x216   : > { %v880_v39 = vpop.permute.xlu0 %879  ;;  %v1415_v16 = vsel %vm1388_vm7, %v1382_v46, %v912_v11 }
 0x217   : > { %v1399_v47 = vsel %vm1388_vm7, %v1366_v20, %v880_v39 }
 0x219   : > { %v1211_v61 = vpop.permute.xlu1 %1210 }
 0x21a   : > { %v1513_v41 = vsel %vm1487_vm10, %v1480_v7, %v1211_v61  ;;  %v1179_v32 = vpop.permute.xlu0 %1178  ;;  %v4161_v7 = vld [vmem:[#allocation62_spill] sm:$0xff] }
 0x21b   : > { %v1497_v9 = vsel %vm1487_vm10, %v1464_v17, %v1179_v32  ;;  %2066 = vmatmul.mubr.msk.f32.gmra.mrb[8].mxu1 %vm1525_vm11, %v1513_v41  ;;  %v4162_v41 = vld [vmem:[#allocation13_spill] sm:$0xff] }
 0x21c   : > { %2042 = vmatmul.mubr.msk.f32.gmra.mrb[8].mxu0 %vm1525_vm11, %v1497_v9 }
 0x21d   : > { %v914_v13 = vpop.permute.xlu1 %913 }
 0x21e   : > { %v882_v6 = vpop.permute.xlu0 %881  ;;  %v1416_v55 = vsel %vm1388_vm7, %v1383_v29, %v914_v13 }
 0x21f   : > { %v1400_v51 = vsel %vm1388_vm7, %v1367_v25, %v882_v6 }
 0x221   : > { %v1010_v10 = vpop.permute.xlu1 %1009 }
 0x222   : > { %v978_v63 = vpop.permute.xlu0 %977  ;;  %v1448_v1 = vsel %vm1421_vm8, %v1415_v16, %v1010_v10  ;;  %v4164_v16 = vld [vmem:[#allocation4_spill] sm:$0xff] }
 0x223   : > { %v1432_v2 = vsel %vm1421_vm8, %v1399_v47, %v978_v63 }
 0x225   : > { %v1012_v33 = vpop.permute.xlu1 %1011 }
 0x226   : > { %v980_v19 = vpop.permute.xlu0 %979  ;;  %v1449_v4 = vsel %vm1421_vm8, %v1416_v55, %v1012_v33 }
 0x227   : > { %v1433_v44 = vsel %vm1421_vm8, %v1400_v51, %v980_v19 }
 0x229   : > { %v1112_v53 = vpop.permute.xlu1 %1111 }
 0x22a   : > { %v1080_v3 = vpop.permute.xlu0 %1079  ;;  %v1481_v56 = vsel %vm1454_vm9, %v1448_v1, %v1112_v53 }
 0x22b   : > { %v1465_v22 = vsel %vm1454_vm9, %v1432_v2, %v1080_v3 }
 0x22d   : > { %v815_v54 = vpop.permute.xlu1 %814 }
 0x22e   : > { %v783_v40 = vpop.permute.xlu0 %782  ;;  %v1384_v61 = vsel %vm1355_vm6, %v4161_v7, %v815_v54 }
 0x22f   : > { %v1368_v32 = vsel %vm1355_vm6, %v4162_v41, %v783_v40 }
 0x231   : > { %v1114_v49 = vpop.permute.xlu1 %1113 }
 0x232   : > { %v1082_v60 = vpop.permute.xlu0 %1081  ;;  %v1482_v38 = vsel %vm1454_vm9, %v1449_v4, %v1114_v49 }
 0x233   : > { %v1466_v0 = vsel %vm1454_vm9, %v1433_v44, %v1082_v60  ;;  %v4163_v60 = vld [vmem:[#allocation23_spill] sm:$0xff] }
 0x235   : > { %v1213_v34 = vpop.permute.xlu1 %1212 }
 0x236   : > { %v1514_v50 = vsel %vm1487_vm10, %v1481_v56, %v1213_v34  ;;  %v1181_v14 = vpop.permute.xlu0 %1180 }
 0x237   : > { %v1498_v23 = vsel %vm1487_vm10, %v1465_v22, %v1181_v14  ;;  %2068 = vmatprep.mubr.msk.f32.mxu1 %vm1525_vm11, %v1514_v50 }
 0x238   : > { %2044 = vmatprep.mubr.msk.f32.mxu0 %vm1525_vm11, %v1498_v23 }
 0x239   : > { %v817_v5 = vpop.permute.xlu1 %816 }
 0x23a   : > { %v785_v31 = vpop.permute.xlu0 %784  ;;  %v1385_v26 = vsel %vm1355_vm6, %v4163_v60, %v817_v5 }
 0x23b   : > { %v1369_v47 = vsel %vm1355_vm6, %v4164_v16, %v785_v31 }
 0x23d   : > { %v916_v36 = vpop.permute.xlu1 %915 }
 0x23e   : > { %v884_v57 = vpop.permute.xlu0 %883  ;;  %v1417_v9 = vsel %vm1388_vm7, %v1384_v61, %v916_v36 }
 0x23f   : > { %v1401_v13 = vsel %vm1388_vm7, %v1368_v32, %v884_v57 }
 0x241   : > { %v1215_v43 = vpop.permute.xlu1 %1214 }
 0x242   : > { %v1515_v48 = vsel %vm1487_vm10, %v1482_v38, %v1215_v43  ;;  %v1183_v52 = vpop.permute.xlu0 %1182 }
 0x243   : > { %v1499_v8 = vsel %vm1487_vm10, %v1466_v0, %v1183_v52  ;;  %2069 = vmatmul.mubr.msk.f32.gmra.mrb[10].mxu1 %vm1525_vm11, %v1515_v48  ;;  %v4165_v48 = vld [vmem:[#allocation43_spill] sm:$0xff] }
 0x244   : > { %2045 = vmatmul.mubr.msk.f32.gmra.mrb[10].mxu0 %vm1525_vm11, %v1499_v8 }
 0x245   : > { %v918_v58 = vpop.permute.xlu1 %917 }
 0x246   : > { %v886_v62 = vpop.permute.xlu0 %885  ;;  %v1418_v1 = vsel %vm1388_vm7, %v1385_v26, %v918_v58  ;;  %v4166_v58 = vld [vmem:[#allocation16_spill] sm:$0xff] }
 0x247   : > { %v1402_v2 = vsel %vm1388_vm7, %v1369_v47, %v886_v62 }
 0x249   : > { %v1014_v15 = vpop.permute.xlu1 %1013 }
 0x24a   : > { %v982_v35 = vpop.permute.xlu0 %981  ;;  %v1450_v6 = vsel %vm1421_vm8, %v1417_v9, %v1014_v15 }
 0x24b   : > { %v1434_v10 = vsel %vm1421_vm8, %v1401_v13, %v982_v35 }
 0x24d   : > { %v1016_v45 = vpop.permute.xlu1 %1015 }
 0x24e   : > { %v984_v59 = vpop.permute.xlu0 %983  ;;  %v1451_v56 = vsel %vm1421_vm8, %v1418_v1, %v1016_v45 }
 0x24f   : > { %v1435_v34 = vsel %vm1421_vm8, %v1402_v2, %v984_v59 }
 0x251   : > { %v1116_v37 = vpop.permute.xlu1 %1115 }
 0x252   : > { %v1084_v11 = vpop.permute.xlu0 %1083  ;;  %v1483_v63 = vsel %vm1454_vm9, %v1450_v6, %v1116_v37 }
 0x253   : > { %v1467_v19 = vsel %vm1454_vm9, %v1434_v10, %v1084_v11 }
 0x255   : > { %v819_v24 = vpop.permute.xlu1 %818 }
 0x256   : > { %v3784_v39 = vpop.permute.xlu0 %786  ;;  %v2055_v18 = vpop.f32.mrb[0].mxu1  ;;  %v1386_v52 = vsel %vm1355_vm6, %v4165_v48, %v819_v24 }
 0x257   : > { %v2031_v21 = vpop.f32.mrb[0].mxu0  ;;  %1868 = vst.msk [vmem:[%s3782_s14 + $0x88] sm:$0xff] %vm1487_vm10, %v2055_v18  ;;  %v1772_v27 = vpop.f32.mrb[1].mxu1  ;;  %v1370_v62 = vsel %vm1355_vm6, %v4166_v58, %v3784_v39  ;;  %v4167_v18 = vld [vmem:[#allocation24_spill] sm:$0xff]  ;;  %v4168_v39 = vld [vmem:[#allocation14_spill] sm:$0xff] }
 0x258   : > { %1852 = vst.msk [vmem:[%s3782_s14 + $0x8] sm:$0xff] %vm1487_vm10, %v2031_v21  ;;  %v1692_v12 = vpop.f32.mrb[1].mxu0  ;;  %1867 = vst.msk [vmem:[%s3782_s14 + $0x80] sm:$0xff] %vm1487_vm10, %v1772_v27 }
 0x259   : > { %1851 = vst.msk [vmem:[%s3782_s14] sm:$0xff] %vm1487_vm10, %v1692_v12  ;;  %v1118_v30 = vpop.permute.xlu1 %1117 }
 0x25a   : > { %v1086_v17 = vpop.permute.xlu0 %1085  ;;  %v1484_v22 = vsel %vm1454_vm9, %v1451_v56, %v1118_v30 }
 0x25b   : > { %v1468_v14 = vsel %vm1454_vm9, %v1435_v34, %v1086_v17 }
 0x25d   : > { %v1217_v33 = vpop.permute.xlu1 %1216 }
 0x25e   : > { %v1516_v53 = vsel %vm1487_vm10, %v1483_v63, %v1217_v33  ;;  %v1185_v3 = vpop.permute.xlu0 %1184 }
 0x25f   : > { %v1500_v54 = vsel %vm1487_vm10, %v1467_v19, %v1185_v3  ;;  %2071 = vmatprep.mubr.msk.f32.mxu1 %vm1525_vm11, %v1516_v53 }
 0x260   : > { %2047 = vmatprep.mubr.msk.f32.mxu0 %vm1525_vm11, %v1500_v54 }
 0x261   : > { %v821_v40 = vpop.permute.xlu1 %820 }
 0x262   : > { %v789_v49 = vpop.permute.xlu0 %788  ;;  %v1387_v21 = vsel %vm1355_vm6, %v4167_v18, %v821_v40 }
 0x263   : > { %v1371_v30 = vsel %vm1355_vm6, %v4168_v39, %v789_v49 }
 0x265   : > { %v920_v46 = vpop.permute.xlu1 %919 }
 0x266   : > { %v888_v20 = vpop.permute.xlu0 %887  ;;  %v1419_v15 = vsel %vm1388_vm7, %v1386_v52, %v920_v46 }
 0x267   : > { %v1403_v35 = vsel %vm1388_vm7, %v1370_v62, %v888_v20 }
 0x269   : > { %v1219_v50 = vpop.permute.xlu1 %1218 }
 0x26a   : > { %v1517_v23 = vsel %vm1487_vm10, %v1484_v22, %v1219_v50  ;;  %v1187_v5 = vpop.permute.xlu0 %1186 }
 0x26b   : > { %v1501_v31 = vsel %vm1487_vm10, %v1468_v14, %v1187_v5  ;;  %2072 = vmatmul.mubr.msk.f32.gmra.mrb[12].mxu1 %vm1525_vm11, %v1517_v23 }
 0x26c   : > { %2048 = vmatmul.mubr.msk.f32.gmra.mrb[12].mxu0 %vm1525_vm11, %v1501_v31 }
 0x26d   : > { %v922_v36 = vpop.permute.xlu1 %921 }
 0x26e   : > { %v890_v28 = vpop.permute.xlu0 %889  ;;  %v1420_v7 = vsel %vm1388_vm7, %v1387_v21, %v922_v36 }
 0x26f   : > { %v1404_v17 = vsel %vm1388_vm7, %v1371_v30, %v890_v28 }
 0x271   : > { %v1018_v29 = vpop.permute.xlu1 %1017 }
 0x272   : > { %v986_v57 = vpop.permute.xlu0 %985  ;;  %v1452_v45 = vsel %vm1421_vm8, %v1419_v15, %v1018_v29 }
 0x273   : > { %v1436_v59 = vsel %vm1421_vm8, %v1403_v35, %v986_v57 }
 0x275   : > { %v1020_v42 = vpop.permute.xlu1 %1019 }
 0x276   : > { %v988_v25 = vpop.permute.xlu0 %987  ;;  %v1453_v41 = vsel %vm1421_vm8, %v1420_v7, %v1020_v42 }
 0x277   : > { %v1437_v32 = vsel %vm1421_vm8, %v1404_v17, %v988_v25 }
 0x279   : > { %v1120_v55 = vpop.permute.xlu1 %1119 }
 0x27a   : > { %v1088_v51 = vpop.permute.xlu0 %1087  ;;  %v2058_v4 = vpop.f32.mrb[2].mxu1  ;;  %v1485_v37 = vsel %vm1454_vm9, %v1452_v45, %v1120_v55 }
 0x27b   : > { %v2034_v44 = vpop.f32.mrb[2].mxu0  ;;  %1870 = vst.msk [vmem:[%s3782_s14 + $0x98] sm:$0xff] %vm1487_vm10, %v2058_v4  ;;  %v1782_v38 = vpop.f32.mrb[3].mxu1  ;;  %v1469_v24 = vsel %vm1454_vm9, %v1436_v59, %v1088_v51 }
 0x27c   : > { %1854 = vst.msk [vmem:[%s3782_s14 + $0x18] sm:$0xff] %vm1487_vm10, %v2034_v44  ;;  %v1702_v43 = vpop.f32.mrb[3].mxu0  ;;  %1869 = vst.msk [vmem:[%s3782_s14 + $0x90] sm:$0xff] %vm1487_vm10, %v1782_v38 }
 0x27d   : > { %1853 = vst.msk [vmem:[%s3782_s14 + $0x10] sm:$0xff] %vm1487_vm10, %v1702_v43  ;;  %v1122_v0 = vpop.permute.xlu1 %1121 }
 0x27e   : > { %v1090_v8 = vpop.permute.xlu0 %1089  ;;  %v1486_v9 = vsel %vm1454_vm9, %v1453_v41, %v1122_v0 }
 0x27f   : > { %v1470_v6 = vsel %vm1454_vm9, %v1437_v32, %v1090_v8 }
 0x281   : > { %v1221_v11 = vpop.permute.xlu1 %1220 }
 0x282   : > { %v1518_v27 = vsel %vm1487_vm10, %v1485_v37, %v1221_v11  ;;  %v1189_v12 = vpop.permute.xlu0 %1188 }
 0x283   : > { %v1502_v61 = vsel %vm1487_vm10, %v1469_v24, %v1189_v12  ;;  %2074 = vmatprep.mubr.msk.f32.mxu1 %vm1525_vm11, %v1518_v27 }
 0x284   : > { %2050 = vmatprep.mubr.msk.f32.mxu0 %vm1525_vm11, %v1502_v61 }
 0x285   : > { %v1223_v13 = vpop.permute.xlu1 %1222 }
 0x286   : > { %v1519_v10 = vsel %vm1487_vm10, %v1486_v9, %v1223_v13  ;;  %v1191_v63 = vpop.permute.xlu0 %1190 }
 0x287   : > { %v1503_v33 = vsel %vm1487_vm10, %v1470_v6, %v1191_v63  ;;  %2075 = vmatmul.mubr.msk.f32.gmra.mrb[14].mxu1 %vm1525_vm11, %v1519_v10 }
 0x288   : > { %2051 = vmatmul.mubr.msk.f32.gmra.mrb[14].mxu0 %vm1525_vm11, %v1503_v33 }
 0x29e   : > { %v2061_v19 = vpop.f32.mrb[4].mxu1 }
 0x29f   : > { %v2037_v53 = vpop.f32.mrb[4].mxu0  ;;  %1872 = vst.msk [vmem:[%s3782_s14 + $0xa8] sm:$0xff] %vm1487_vm10, %v2061_v19  ;;  %v1792_v3 = vpop.f32.mrb[5].mxu1 }
 0x2a0   : > { %1856 = vst.msk [vmem:[%s3782_s14 + $0x28] sm:$0xff] %vm1487_vm10, %v2037_v53  ;;  %v1712_v54 = vpop.f32.mrb[5].mxu0  ;;  %1871 = vst.msk [vmem:[%s3782_s14 + $0xa0] sm:$0xff] %vm1487_vm10, %v1792_v3 }
 0x2a1   : > { %1855 = vst.msk [vmem:[%s3782_s14 + $0x20] sm:$0xff] %vm1487_vm10, %v1712_v54 }
 0x2c6   : > { %v2064_v40 = vpop.f32.mrb[6].mxu1 }
 0x2c7   : > { %v2040_v49 = vpop.f32.mrb[6].mxu0  ;;  %1874 = vst.msk [vmem:[%s3782_s14 + $0xb8] sm:$0xff] %vm1487_vm10, %v2064_v40  ;;  %v1802_v46 = vpop.f32.mrb[7].mxu1 }
 0x2c8   : > { %1858 = vst.msk [vmem:[%s3782_s14 + $0x38] sm:$0xff] %vm1487_vm10, %v2040_v49  ;;  %v1722_v60 = vpop.f32.mrb[7].mxu0  ;;  %1873 = vst.msk [vmem:[%s3782_s14 + $0xb0] sm:$0xff] %vm1487_vm10, %v1802_v46 }
 0x2c9   : > { %1857 = vst.msk [vmem:[%s3782_s14 + $0x30] sm:$0xff] %vm1487_vm10, %v1722_v60 }
 0x2ee   : > { %v2067_v26 = vpop.f32.mrb[8].mxu1 }
 0x2ef   : > { %v2043_v20 = vpop.f32.mrb[8].mxu0  ;;  %1876 = vst.msk [vmem:[%s3782_s14 + $0xc8] sm:$0xff] %vm1487_vm10, %v2067_v26  ;;  %v1812_v16 = vpop.f32.mrb[9].mxu1 }
 0x2f0   : > { %1860 = vst.msk [vmem:[%s3782_s14 + $0x48] sm:$0xff] %vm1487_vm10, %v2043_v20  ;;  %v1732_v47 = vpop.f32.mrb[9].mxu0  ;;  %1875 = vst.msk [vmem:[%s3782_s14 + $0xc0] sm:$0xff] %vm1487_vm10, %v1812_v16 }
 0x2f1   : > { %1859 = vst.msk [vmem:[%s3782_s14 + $0x40] sm:$0xff] %vm1487_vm10, %v1732_v47 }
 0x316   : > { %v2070_v1 = vpop.f32.mrb[10].mxu1 }
 0x317   : > { %v2046_v2 = vpop.f32.mrb[10].mxu0  ;;  %1878 = vst.msk [vmem:[%s3782_s14 + $0xd8] sm:$0xff] %vm1487_vm10, %v2070_v1  ;;  %v1822_v56 = vpop.f32.mrb[11].mxu1 }
 0x318   : > { %1862 = vst.msk [vmem:[%s3782_s14 + $0x58] sm:$0xff] %vm1487_vm10, %v2046_v2  ;;  %v1742_v34 = vpop.f32.mrb[11].mxu0  ;;  %1877 = vst.msk [vmem:[%s3782_s14 + $0xd0] sm:$0xff] %vm1487_vm10, %v1822_v56 }
 0x319   : > { %1861 = vst.msk [vmem:[%s3782_s14 + $0x50] sm:$0xff] %vm1487_vm10, %v1742_v34 }
 0x33e   : > { %v2073_v22 = vpop.f32.mrb[12].mxu1 }
 0x33f   : > { %v2049_v50 = vpop.f32.mrb[12].mxu0  ;;  %1880 = vst.msk [vmem:[%s3782_s14 + $0xe8] sm:$0xff] %vm1487_vm10, %v2073_v22  ;;  %v1832_v14 = vpop.f32.mrb[13].mxu1 }
 0x340   : > { %1864 = vst.msk [vmem:[%s3782_s14 + $0x68] sm:$0xff] %vm1487_vm10, %v2049_v50  ;;  %v1752_v23 = vpop.f32.mrb[13].mxu0  ;;  %1879 = vst.msk [vmem:[%s3782_s14 + $0xe0] sm:$0xff] %vm1487_vm10, %v1832_v14 }
 0x341   : > { %1863 = vst.msk [vmem:[%s3782_s14 + $0x60] sm:$0xff] %vm1487_vm10, %v1752_v23 }
 0x35a   : > { %v2076_v5 = vpop.f32.mrb[14].mxu1 }
 0x35b   : > { %v2052_v31 = vpop.f32.mrb[14].mxu0  ;;  %1882 = vst.msk [vmem:[%s3782_s14 + $0xf8] sm:$0xff] %vm1487_vm10, %v2076_v5  ;;  %v1842_v36 = vpop.f32.mrb[15].mxu1 }
 0x35c   : > { %1866 = vst.msk [vmem:[%s3782_s14 + $0x78] sm:$0xff] %vm1487_vm10, %v2052_v31  ;;  %v1762_v28 = vpop.f32.mrb[15].mxu0  ;;  %1881 = vst.msk [vmem:[%s3782_s14 + $0xf0] sm:$0xff] %vm1487_vm10, %v1842_v36 }
 0x35d   : > { %1865 = vst.msk [vmem:[%s3782_s14 + $0x70] sm:$0xff] %vm1487_vm10, %v1762_v28 }
 0x35e PF: > { %s14_s15 = sadd.s32 1, %s2133_s15  }
 0x35f   : > { %p11_p4 = scmp.ge.s32.totalorder %s14_s15, 4  }
 0x361   :  { %13 = sbr.rel (!%p11_p4) target bundleno = 1 (0x1), region = 66 }

</bundles_post_ra>
